<compile_context>
chip_gen: v7x
topology: tpu7x:2x2x1
jax: 0.10.0
libtpu: 0.0.40
codegen_flags: <defaults>
</compile_context>

<pallas_src>
import jax
import jax.numpy as jnp
from jax.experimental import pallas as pl
from jax.experimental.pallas import tpu as pltpu

# ----------------------------- configuration ------------------------------
B, S, H = 2, 8, 32            # batch, seq, bert hidden
VOCAB = 100
VOCAB_PAD = 104               # vocab rounded up to a multiple of 8
FFN = 64                      # bert intermediate size
GRU_H = 16                    # gru_hidden_size
NUM_FILTERS = 8               # num_filters
KERNEL_SIZES = (3, 4, 5)
MAX_K = max(KERNEL_SIZES)
NUM_CLASSES = 2
CW = NUM_FILTERS * len(KERNEL_SIZES)                    # 24
D_FEAT = 2 * GRU_H + CW                                 # 56
LANES = 128

# --- wH_slab column blocks (all 128-lane aligned; contraction dim = H) ------
WQ_COL, WK_COL, WV_COL = 0 * LANES, 1 * LANES, 2 * LANES
WO_COL, W1_COL = 3 * LANES, 4 * LANES
WIH_F_COL, WIH_B_COL = 5 * LANES, 6 * LANES
CONV_COL = 7 * LANES
WH_COLS = (7 + MAX_K) * LANES                           # 1536

# --- misc_slab row blocks (all 8-sublane aligned) ----------------------------
W2_ROW = 0
WHH_ROW = FFN                                           # 64
FC_ROW = FFN + GRU_H                                    # 80
WEMB_ROW = FC_ROW + D_FEAT                              # 136
POS_ROW = WEMB_ROW + VOCAB_PAD                          # 240
MISC_ROWS = POS_ROW + S                                 # 248

# --- vec_slab rows (one bias / LN vector per 128-lane row) -------------------
(R_EMB_G, R_EMB_B, R_BQ, R_BK, R_BV, R_BO, R_LN1G, R_LN1B, R_B1, R_B2,
 R_LN2G, R_LN2B, R_BIH_F, R_BHH_F, R_BIH_B, R_BHH_B, R_CONVB, R_FCB) = range(18)
VEC_ROWS = 18


def _vmem():
    return pl.BlockSpec(memory_space=pltpu.MemorySpace.VMEM)


def _ln(x, g, b, eps=1e-12):
    mu = jnp.mean(x, axis=-1, keepdims=True)
    var = jnp.mean((x - mu) ** 2, axis=-1, keepdims=True)
    return (x - mu) * jax.lax.rsqrt(var + eps) * g + b


# ------------------------- fused end-to-end kernel --------------------------
def robert_fusion_kernel(ids_ref, mask_ref, wH_ref, misc_ref, vec_ref, out_ref):
    def vrow(r, n):                                      # one bias / LN row
        return vec_ref[r:r + 1, 0:n]                     # (1, n)

    # ------------- embedding: one-hot gather (MXU) + pos add + LN -----------
    ids = ids_ref[...]                                   # (B*S, 1) int32
    iota = jax.lax.broadcasted_iota(jnp.int32, (B * S, VOCAB_PAD), 1)
    onehot = (iota == ids).astype(jnp.float32)           # (B*S, VOCAB_PAD)
    word = misc_ref[WEMB_ROW:WEMB_ROW + VOCAB_PAD, 0:H]  # (104, 32)
    tok = jnp.dot(onehot, word, preferred_element_type=jnp.float32)
    pos = misc_ref[POS_ROW:POS_ROW + S, 0:H]             # (S, H)
    pos = jnp.broadcast_to(pos[None], (B, S, H)).reshape(B * S, H)
    x2 = _ln(tok + pos, vrow(R_EMB_G, H), vrow(R_EMB_B, H))      # (B*S, H)

    # ----------------- single-layer transformer encoder ---------------------
    # fused QKV: each of Q/K/V sits in its own 128-lane tile -> aligned slices
    qkv = jnp.dot(x2, wH_ref[:, 0:3 * LANES], preferred_element_type=jnp.float32)
    q = (qkv[:, WQ_COL:WQ_COL + H] + vrow(R_BQ, H)).reshape(B, S, H)
    k = (qkv[:, WK_COL:WK_COL + H] + vrow(R_BK, H)).reshape(B, S, H)
    v = (qkv[:, WV_COL:WV_COL + H] + vrow(R_BV, H)).reshape(B, S, H)

    scores = jnp.einsum('bqd,bkd->bqk', q, k,
                        preferred_element_type=jnp.float32) * (H ** -0.5)
    mask = mask_ref[...]                                 # (B, S), 1.0 = keep
    scores = scores + (1.0 - mask)[:, None, :] * (-1e9)
    scores = scores - jnp.max(scores, axis=-1, keepdims=True)
    p_attn = jnp.exp(scores)
    p_attn = p_attn * pl.reciprocal(jnp.sum(p_attn, axis=-1, keepdims=True),
                                    approx=True)
    ctx = jnp.einsum('bqk,bkd->bqd', p_attn, v,
                     preferred_element_type=jnp.float32).reshape(B * S, H)

    attn = (jnp.dot(ctx, wH_ref[:, WO_COL:WO_COL + H],
                    preferred_element_type=jnp.float32) + vrow(R_BO, H))
    h1 = _ln(x2 + attn, vrow(R_LN1G, H), vrow(R_LN1B, H))
    ff = (jnp.dot(h1, wH_ref[:, W1_COL:W1_COL + FFN],
                  preferred_element_type=jnp.float32) + vrow(R_B1, FFN))
    ff = jax.nn.gelu(ff, approximate=True)
    ff = (jnp.dot(ff, misc_ref[W2_ROW:W2_ROW + FFN, 0:H],
                  preferred_element_type=jnp.float32) + vrow(R_B2, H))
    h2 = _ln(h1 + ff, vrow(R_LN2G, H), vrow(R_LN2B, H))  # (B*S, H) last_hidden_state

    # ---- ONE fused projection: GRU-fwd + GRU-bwd + all TextCNN shifts ------
    GC = jnp.dot(h2, wH_ref[:, WIH_F_COL:WH_COLS],
                 preferred_element_type=jnp.float32)     # (B*S, 896)
    giB0 = WIH_B_COL - WIH_F_COL                         # 128
    conv0 = CONV_COL - WIH_F_COL                         # 256

    hg = GRU_H

    def gru_cell(gi, gh, h_prev):
        # PyTorch gate order [r, z, n]; one 32-lane sigmoid over the [r|z] block.
        rz = jax.nn.sigmoid(gi[:, 0:2 * hg] + gh[:, 0:2 * hg])
        r, z = rz[:, 0:hg], rz[:, hg:2 * hg]
        n = jnp.tanh(gi[:, 2 * hg:3 * hg] + r * gh[:, 2 * hg:3 * hg])
        return (1.0 - z) * n + z * h_prev

    # forward direction: only the tiny h @ Whh recurrence dot stays serial
    gi_f = (GC[:, 0:3 * hg] + vrow(R_BIH_F, 3 * hg)).reshape(B, S, 3 * hg)
    whh_f = misc_ref[WHH_ROW:WHH_ROW + hg, 0:3 * hg]     # (GRU_H, 3*GRU_H)
    bhh_f = vrow(R_BHH_F, 3 * hg)
    h_f = jnp.zeros((B, hg), jnp.float32)
    for t in range(S):                                   # S = 8, static unroll
        gh = jnp.dot(h_f, whh_f, preferred_element_type=jnp.float32) + bhh_f
        h_f = gru_cell(gi_f[:, t, :], gh, h_f)

    # backward direction: output[:, -1, GRU_H:] is the reverse cell after
    # processing only x[:, S-1] from h0 = 0 -> exactly one step, Whh_b unused.
    gi_b = (GC[:, giB0:giB0 + 3 * hg].reshape(B, S, 3 * hg)[:, S - 1:S, :]
            .reshape(B, 3 * hg) + vrow(R_BIH_B, 3 * hg))
    gh_b = vrow(R_BHH_B, 3 * hg)                         # h0 @ Whh_b == 0
    h_b = gru_cell(gi_b, gh_b, jnp.zeros((B, hg), jnp.float32))

    # -------- TextCNN: shift/accumulate the fused conv RESULTS in GC --------
    D = GC[:, conv0:conv0 + MAX_K * LANES].reshape(B, S, MAX_K * LANES)
    conv_bias = vrow(R_CONVB, CW)                        # (1, 24) = [b3|b4|b5]

    def conv_branch(bi, ksz):
        lane0 = bi * NUM_FILTERS
        L = S - ksz + 1
        acc = D[:, 0:L, lane0:lane0 + NUM_FILTERS]
        for i in range(1, ksz):                          # static unroll
            c = i * LANES + lane0
            acc = acc + D[:, i:i + L, c:c + NUM_FILTERS]
        acc = acc + conv_bias[:, lane0:lane0 + NUM_FILTERS]
        return jnp.max(jnp.maximum(acc, 0.0), axis=1)    # (B, NUM_FILTERS)

    cnn = jnp.concatenate(
        [conv_branch(bi, ksz) for bi, ksz in enumerate(KERNEL_SIZES)], axis=1)

    # --------------------------- FC head (one dot) ---------------------------
    feats = jnp.concatenate([h_f, h_b, cnn], axis=1)     # (B, D_FEAT) = (B, 56)
    fc_w = misc_ref[FC_ROW:FC_ROW + D_FEAT, 0:NUM_CLASSES]
    out_ref[...] = (jnp.dot(feats, fc_w, preferred_element_type=jnp.float32)
                    + vrow(R_FCB, NUM_CLASSES))          # (B, NUM_CLASSES)


# -------------------------------- wrapper -----------------------------------
def forward(params, input_ids, attention_mask, labels=None):
    ids = input_ids.reshape(B * S, 1).astype(jnp.int32)
    args = (ids, attention_mask.astype(jnp.float32),
            params["wH_slab"], params["misc_slab"], params["vec_slab"])
    logits = pl.pallas_call(
        robert_fusion_kernel,
        out_shape=jax.ShapeDtypeStruct((B, NUM_CLASSES), jnp.float32),
        in_specs=[_vmem()] * len(args),
        out_specs=_vmem(),
    )(*args)
    if labels is not None:
        logp = jax.nn.log_softmax(logits, axis=-1)
        loss = -jnp.mean(jnp.take_along_axis(logp, labels[:, None], axis=1))
        return loss, logits
    return logits


# ------------------------ deterministic parameter init ----------------------
def init_params(seed=0):
    keys = iter(jax.random.split(jax.random.PRNGKey(seed), 64))

    def nrm(shape, scale=0.05):
        return (scale * jax.random.normal(next(keys), shape)).astype(jnp.float32)

    # raw parameters (mirroring the PyTorch module's tensors)
    word_emb, pos_emb = nrm((VOCAB, H)), nrm((S, H))
    wq, wk, wv = nrm((H, H)), nrm((H, H)), nrm((H, H))
    bq, bk, bv = nrm((1, H)), nrm((1, H)), nrm((1, H))
    wo, bo = nrm((H, H)), nrm((1, H))
    w1, b1 = nrm((H, FFN)), nrm((1, FFN))
    w2, b2 = nrm((FFN, H)), nrm((1, H))
    gru = {}
    for d in ("f", "b"):                 # pre-transposed (in, 3*hidden), gates [r|z|n]
        gru[f"wih_{d}"] = nrm((H, 3 * GRU_H))
        gru[f"whh_{d}"] = nrm((GRU_H, 3 * GRU_H))   # whh_b is drawn but unused
        gru[f"bih_{d}"] = nrm((1, 3 * GRU_H))
        gru[f"bhh_{d}"] = nrm((1, 3 * GRU_H))
    convs = {k: (nrm((NUM_FILTERS, k, H)), nrm((1, NUM_FILTERS)))
             for k in KERNEL_SIZES}
    fc_w, fc_b = nrm((D_FEAT, NUM_CLASSES)), nrm((1, NUM_CLASSES))

    # ---- slab 1: every weight contracting over H, 128-lane-aligned blocks ----
    wH = jnp.zeros((H, WH_COLS), jnp.float32)
    for col, w in ((WQ_COL, wq), (WK_COL, wk), (WV_COL, wv), (WO_COL, wo),
                   (W1_COL, w1), (WIH_F_COL, gru["wih_f"]),
                   (WIH_B_COL, gru["wih_b"])):
        wH = wH.at[:, col:col + w.shape[1]].set(w)
    for i in range(MAX_K):                               # conv shift weights
        for bi, k in enumerate(KERNEL_SIZES):
            if i < k:
                c0 = CONV_COL + i * LANES + bi * NUM_FILTERS
                wH = wH.at[:, c0:c0 + NUM_FILTERS].set(convs[k][0][:, i, :].T)

    # ---- slab 2: remaining 2-D weights + embedding tables, row-stacked -------
    misc = jnp.zeros((MISC_ROWS, LANES), jnp.float32)
    misc = misc.at[W2_ROW:W2_ROW + FFN, :H].set(w2)
    misc = misc.at[WHH_ROW:WHH_ROW + GRU_H, :3 * GRU_H].set(gru["whh_f"])
    misc = misc.at[FC_ROW:FC_ROW + D_FEAT, :NUM_CLASSES].set(fc_w)
    misc = misc.at[WEMB_ROW:WEMB_ROW + VOCAB, :H].set(word_emb)
    misc = misc.at[POS_ROW:POS_ROW + S, :H].set(pos_emb)

    # ---- slab 3: every bias / LayerNorm vector, one per 128-lane row ---------
    vec = jnp.zeros((VEC_ROWS, LANES), jnp.float32)

    def put(v, row, a):
        a = a.reshape(-1)
        return v.at[row, :a.shape[0]].set(a)

    vec = put(vec, R_EMB_G, jnp.ones((H,), jnp.float32))
    vec = put(vec, R_EMB_B, jnp.zeros((H,), jnp.float32))
    vec = put(vec, R_BQ, bq); vec = put(vec, R_BK, bk); vec = put(vec, R_BV, bv)
    vec = put(vec, R_BO, bo)
    vec = put(vec, R_LN1G, jnp.ones((H,), jnp.float32))
    vec = put(vec, R_LN1B, jnp.zeros((H,), jnp.float32))
    vec = put(vec, R_B1, b1); vec = put(vec, R_B2, b2)
    vec = put(vec, R_LN2G, jnp.ones((H,), jnp.float32))
    vec = put(vec, R_LN2B, jnp.zeros((H,), jnp.float32))
    vec = put(vec, R_BIH_F, gru["bih_f"]); vec = put(vec, R_BHH_F, gru["bhh_f"])
    vec = put(vec, R_BIH_B, gru["bih_b"]); vec = put(vec, R_BHH_B, gru["bhh_b"])
    vec = put(vec, R_CONVB,
              jnp.concatenate([convs[k][1] for k in KERNEL_SIZES], axis=1))
    vec = put(vec, R_FCB, fc_b)

    return {"wH_slab": wH, "misc_slab": misc, "vec_slab": vec}


# ---------------------------------- main -------------------------------------
if __name__ == "__main__":
    params = init_params(0)
    k1, _ = jax.random.split(jax.random.PRNGKey(0))
    input_ids = jax.random.randint(k1, (B, S), 0, VOCAB, dtype=jnp.int32)
    attention_mask = jnp.ones((B, S), jnp.float32)

    fwd = jax.jit(lambda p, ids, m: forward(p, ids, m))
    logits = fwd(params, input_ids, attention_mask)
    jax.block_until_ready(logits)

    assert logits.shape == (B, NUM_CLASSES) and logits.dtype == jnp.float32
    print("KERNEL_OK")
</pallas_src>

<mosaic_0001>
module attributes {stable_mosaic.version = 11 : i64} {
  func.func @robert_fusion_kernel(%arg0: memref<16x1xi32, #tpu.memory_space<vmem>>, %arg1: memref<2x8xf32, #tpu.memory_space<vmem>>, %arg2: memref<32x1536xf32, #tpu.memory_space<vmem>>, %arg3: memref<248x128xf32, #tpu.memory_space<vmem>>, %arg4: memref<18x128xf32, #tpu.memory_space<vmem>>, %arg5: memref<2x2xf32, #tpu.memory_space<vmem>>) attributes {dimension_semantics = [], scalar_prefetch = 0 : i64, scratch_operands = 0 : i64, tpu.core_type = #tpu.core_type<tc>} {
    %c0 = arith.constant 0 : index
    %c0_0 = arith.constant 0 : index
    %0 = vector.load %arg0[%c0, %c0_0] : memref<16x1xi32, #tpu.memory_space<vmem>>, vector<16x1xi32>
    %1 = tpu.iota {dimensions = array<i32: 1>} : vector<16x104xi32>
    %2 = vector.broadcast %0 : vector<16x1xi32> to vector<16x104xi32>
    %3 = arith.cmpi eq, %1, %2 : vector<16x104xi32>
    %4 = arith.extui %3 : vector<16x104xi1> to vector<16x104xi32>
    %5 = arith.sitofp %4 : vector<16x104xi32> to vector<16x104xf32>
    %c136 = arith.constant 136 : index
    %c0_1 = arith.constant 0 : index
    %6 = vector.load %arg3[%c136, %c0_1] : memref<248x128xf32, #tpu.memory_space<vmem>>, vector<104x32xf32>
    %cst = arith.constant dense<0.000000e+00> : vector<16x32xf32>
    %7 = tpu.matmul %5, %6, %cst {dimension_numbers = #tpu.dot_dimension_numbers<[1], [0], [0], [1], [0, 0, 1, 1], [], []>} : vector<16x104xf32>, vector<104x32xf32>, vector<16x32xf32> -> vector<16x32xf32>
    %c240 = arith.constant 240 : index
    %c0_2 = arith.constant 0 : index
    %8 = vector.load %arg3[%c240, %c0_2] : memref<248x128xf32, #tpu.memory_space<vmem>>, vector<8x32xf32>
    %9 = vector.shape_cast %8 : vector<8x32xf32> to vector<1x8x32xf32>
    %10 = vector.shape_cast %9 : vector<1x8x32xf32> to vector<1x8x32xf32>
    %11 = vector.broadcast %10 : vector<1x8x32xf32> to vector<2x8x32xf32>
    %12 = vector.shape_cast %11 : vector<2x8x32xf32> to vector<16x32xf32>
    %13 = arith.addf %7, %12 : vector<16x32xf32>
    %c0_3 = arith.constant 0 : index
    %c0_4 = arith.constant 0 : index
    %14 = vector.load %arg4[%c0_3, %c0_4] : memref<18x128xf32, #tpu.memory_space<vmem>>, vector<1x32xf32>
    %c1 = arith.constant 1 : index
    %c0_5 = arith.constant 0 : index
    %15 = vector.load %arg4[%c1, %c0_5] : memref<18x128xf32, #tpu.memory_space<vmem>>, vector<1x32xf32>
    %cst_6 = arith.constant dense<0.000000e+00> : vector<16xf32>
    %16 = vector.multi_reduction <add>, %13, %cst_6 [1] : vector<16x32xf32> to vector<16xf32>
    %17 = vector.shape_cast %16 : vector<16xf32> to vector<16x1xf32>
    %cst_7 = arith.constant 3.200000e+01 : f32
    %18 = vector.broadcast %cst_7 : f32 to vector<16x1xf32>
    %19 = arith.divf %17, %18 : vector<16x1xf32>
    %20 = vector.broadcast %19 : vector<16x1xf32> to vector<16x32xf32>
    %21 = arith.subf %13, %20 : vector<16x32xf32>
    %22 = arith.mulf %21, %21 : vector<16x32xf32>
    %cst_8 = arith.constant dense<0.000000e+00> : vector<16xf32>
    %23 = vector.multi_reduction <add>, %22, %cst_8 [1] : vector<16x32xf32> to vector<16xf32>
    %24 = vector.shape_cast %23 : vector<16xf32> to vector<16x1xf32>
    %cst_9 = arith.constant 3.200000e+01 : f32
    %25 = vector.broadcast %cst_9 : f32 to vector<16x1xf32>
    %26 = arith.divf %24, %25 : vector<16x1xf32>
    %27 = vector.broadcast %19 : vector<16x1xf32> to vector<16x32xf32>
    %28 = arith.subf %13, %27 : vector<16x32xf32>
    %cst_10 = arith.constant 9.99999996E-13 : f32
    %29 = vector.broadcast %cst_10 : f32 to vector<16x1xf32>
    %30 = arith.addf %26, %29 : vector<16x1xf32>
    %31 = math.rsqrt %30 : vector<16x1xf32>
    %32 = vector.broadcast %31 : vector<16x1xf32> to vector<16x32xf32>
    %33 = arith.mulf %28, %32 : vector<16x32xf32>
    %34 = vector.broadcast %14 : vector<1x32xf32> to vector<16x32xf32>
    %35 = arith.mulf %33, %34 : vector<16x32xf32>
    %36 = vector.broadcast %15 : vector<1x32xf32> to vector<16x32xf32>
    %37 = arith.addf %35, %36 : vector<16x32xf32>
    %c0_11 = arith.constant 0 : index
    %c0_12 = arith.constant 0 : index
    %38 = vector.load %arg2[%c0_11, %c0_12] : memref<32x1536xf32, #tpu.memory_space<vmem>>, vector<32x384xf32>
    %cst_13 = arith.constant dense<0.000000e+00> : vector<16x384xf32>
    %39 = tpu.matmul %37, %38, %cst_13 {dimension_numbers = #tpu.dot_dimension_numbers<[1], [0], [0], [1], [0, 0, 1, 1], [], []>} : vector<16x32xf32>, vector<32x384xf32>, vector<16x384xf32> -> vector<16x384xf32>
    %40 = vector.extract_strided_slice %39 {offsets = [0, 0], sizes = [16, 32], strides = [1, 1]} : vector<16x384xf32> to vector<16x32xf32>
    %c2 = arith.constant 2 : index
    %c0_14 = arith.constant 0 : index
    %41 = vector.load %arg4[%c2, %c0_14] : memref<18x128xf32, #tpu.memory_space<vmem>>, vector<1x32xf32>
    %42 = vector.broadcast %41 : vector<1x32xf32> to vector<16x32xf32>
    %43 = arith.addf %40, %42 : vector<16x32xf32>
    %44 = vector.shape_cast %43 : vector<16x32xf32> to vector<2x8x32xf32>
    %45 = vector.extract_strided_slice %39 {offsets = [0, 128], sizes = [16, 32], strides = [1, 1]} : vector<16x384xf32> to vector<16x32xf32>
    %c3 = arith.constant 3 : index
    %c0_15 = arith.constant 0 : index
    %46 = vector.load %arg4[%c3, %c0_15] : memref<18x128xf32, #tpu.memory_space<vmem>>, vector<1x32xf32>
    %47 = vector.broadcast %46 : vector<1x32xf32> to vector<16x32xf32>
    %48 = arith.addf %45, %47 : vector<16x32xf32>
    %49 = vector.shape_cast %48 : vector<16x32xf32> to vector<2x8x32xf32>
    %50 = vector.extract_strided_slice %39 {offsets = [0, 256], sizes = [16, 32], strides = [1, 1]} : vector<16x384xf32> to vector<16x32xf32>
    %c4 = arith.constant 4 : index
    %c0_16 = arith.constant 0 : index
    %51 = vector.load %arg4[%c4, %c0_16] : memref<18x128xf32, #tpu.memory_space<vmem>>, vector<1x32xf32>
    %52 = vector.broadcast %51 : vector<1x32xf32> to vector<16x32xf32>
    %53 = arith.addf %50, %52 : vector<16x32xf32>
    %54 = vector.shape_cast %53 : vector<16x32xf32> to vector<2x8x32xf32>
    "tpu.trace_start"() <{level = 10 : i32, message = "bqd,bkd->bqk"}> : () -> ()
    %cst_17 = arith.constant dense<0.000000e+00> : vector<2x8x8xf32>
    %55 = tpu.matmul %44, %49, %cst_17 {dimension_numbers = #tpu.dot_dimension_numbers<[2], [2], [1], [1], [0, 0, 0, 1, 1, 1], [0], [0]>} : vector<2x8x32xf32>, vector<2x8x32xf32>, vector<2x8x8xf32> -> vector<2x8x8xf32>
    "tpu.trace_stop"() : () -> ()
    %cst_18 = arith.constant 0.176776692 : f32
    %56 = vector.broadcast %cst_18 : f32 to vector<2x8x8xf32>
    %57 = arith.mulf %55, %56 : vector<2x8x8xf32>
    %c0_19 = arith.constant 0 : index
    %c0_20 = arith.constant 0 : index
    %58 = vector.load %arg1[%c0_19, %c0_20] : memref<2x8xf32, #tpu.memory_space<vmem>>, vector<2x8xf32>
    %cst_21 = arith.constant 1.000000e+00 : f32
    %59 = vector.broadcast %cst_21 : f32 to vector<2x8xf32>
    %60 = arith.subf %59, %58 : vector<2x8xf32>
    %61 = vector.shape_cast %60 : vector<2x8xf32> to vector<2x1x8xf32>
    %cst_22 = arith.constant -1.000000e+09 : f32
    %62 = vector.broadcast %cst_22 : f32 to vector<2x1x8xf32>
    %63 = arith.mulf %61, %62 : vector<2x1x8xf32>
    %64 = vector.broadcast %63 : vector<2x1x8xf32> to vector<2x8x8xf32>
    %65 = arith.addf %57, %64 : vector<2x8x8xf32>
    %cst_23 = arith.constant dense<0xFF800000> : vector<2x8xf32>
    %66 = vector.multi_reduction <maximumf>, %65, %cst_23 [2] : vector<2x8x8xf32> to vector<2x8xf32>
    %67 = vector.shape_cast %66 : vector<2x8xf32> to vector<2x8x1xf32>
    %68 = vector.broadcast %67 : vector<2x8x1xf32> to vector<2x8x8xf32>
    %69 = arith.subf %65, %68 : vector<2x8x8xf32>
    %70 = math.exp %69 : vector<2x8x8xf32>
    %cst_24 = arith.constant dense<0.000000e+00> : vector<2x8xf32>
    %71 = vector.multi_reduction <add>, %70, %cst_24 [2] : vector<2x8x8xf32> to vector<2x8xf32>
    %72 = vector.shape_cast %71 : vector<2x8xf32> to vector<2x8x1xf32>
    %73 = tpu.reciprocal %72 {approx = true} : vector<2x8x1xf32> -> vector<2x8x1xf32>
    %74 = vector.broadcast %73 : vector<2x8x1xf32> to vector<2x8x8xf32>
    %75 = arith.mulf %70, %74 : vector<2x8x8xf32>
    "tpu.trace_start"() <{level = 10 : i32, message = "bqk,bkd->bqd"}> : () -> ()
    %cst_25 = arith.constant dense<0.000000e+00> : vector<2x8x32xf32>
    %76 = tpu.matmul %75, %54, %cst_25 {dimension_numbers = #tpu.dot_dimension_numbers<[2], [1], [1], [2], [0, 0, 0, 1, 1, 2], [0], [0]>} : vector<2x8x8xf32>, vector<2x8x32xf32>, vector<2x8x32xf32> -> vector<2x8x32xf32>
    "tpu.trace_stop"() : () -> ()
    %77 = vector.shape_cast %76 : vector<2x8x32xf32> to vector<16x32xf32>
    %c0_26 = arith.constant 0 : index
    %c384 = arith.constant 384 : index
    %78 = vector.load %arg2[%c0_26, %c384] : memref<32x1536xf32, #tpu.memory_space<vmem>>, vector<32x32xf32>
    %cst_27 = arith.constant dense<0.000000e+00> : vector<16x32xf32>
    %79 = tpu.matmul %77, %78, %cst_27 {dimension_numbers = #tpu.dot_dimension_numbers<[1], [0], [0], [1], [0, 0, 1, 1], [], []>} : vector<16x32xf32>, vector<32x32xf32>, vector<16x32xf32> -> vector<16x32xf32>
    %c5 = arith.constant 5 : index
    %c0_28 = arith.constant 0 : index
    %80 = vector.load %arg4[%c5, %c0_28] : memref<18x128xf32, #tpu.memory_space<vmem>>, vector<1x32xf32>
    %81 = vector.broadcast %80 : vector<1x32xf32> to vector<16x32xf32>
    %82 = arith.addf %79, %81 : vector<16x32xf32>
    %83 = arith.addf %37, %82 : vector<16x32xf32>
    %c6 = arith.constant 6 : index
    %c0_29 = arith.constant 0 : index
    %84 = vector.load %arg4[%c6, %c0_29] : memref<18x128xf32, #tpu.memory_space<vmem>>, vector<1x32xf32>
    %c7 = arith.constant 7 : index
    %c0_30 = arith.constant 0 : index
    %85 = vector.load %arg4[%c7, %c0_30] : memref<18x128xf32, #tpu.memory_space<vmem>>, vector<1x32xf32>
    %cst_31 = arith.constant dense<0.000000e+00> : vector<16xf32>
    %86 = vector.multi_reduction <add>, %83, %cst_31 [1] : vector<16x32xf32> to vector<16xf32>
    %87 = vector.shape_cast %86 : vector<16xf32> to vector<16x1xf32>
    %cst_32 = arith.constant 3.200000e+01 : f32
    %88 = vector.broadcast %cst_32 : f32 to vector<16x1xf32>
    %89 = arith.divf %87, %88 : vector<16x1xf32>
    %90 = vector.broadcast %89 : vector<16x1xf32> to vector<16x32xf32>
    %91 = arith.subf %83, %90 : vector<16x32xf32>
    %92 = arith.mulf %91, %91 : vector<16x32xf32>
    %cst_33 = arith.constant dense<0.000000e+00> : vector<16xf32>
    %93 = vector.multi_reduction <add>, %92, %cst_33 [1] : vector<16x32xf32> to vector<16xf32>
    %94 = vector.shape_cast %93 : vector<16xf32> to vector<16x1xf32>
    %cst_34 = arith.constant 3.200000e+01 : f32
    %95 = vector.broadcast %cst_34 : f32 to vector<16x1xf32>
    %96 = arith.divf %94, %95 : vector<16x1xf32>
    %97 = vector.broadcast %89 : vector<16x1xf32> to vector<16x32xf32>
    %98 = arith.subf %83, %97 : vector<16x32xf32>
    %cst_35 = arith.constant 9.99999996E-13 : f32
    %99 = vector.broadcast %cst_35 : f32 to vector<16x1xf32>
    %100 = arith.addf %96, %99 : vector<16x1xf32>
    %101 = math.rsqrt %100 : vector<16x1xf32>
    %102 = vector.broadcast %101 : vector<16x1xf32> to vector<16x32xf32>
    %103 = arith.mulf %98, %102 : vector<16x32xf32>
    %104 = vector.broadcast %84 : vector<1x32xf32> to vector<16x32xf32>
    %105 = arith.mulf %103, %104 : vector<16x32xf32>
    %106 = vector.broadcast %85 : vector<1x32xf32> to vector<16x32xf32>
    %107 = arith.addf %105, %106 : vector<16x32xf32>
    %c0_36 = arith.constant 0 : index
    %c512 = arith.constant 512 : index
    %108 = vector.load %arg2[%c0_36, %c512] : memref<32x1536xf32, #tpu.memory_space<vmem>>, vector<32x64xf32>
    %cst_37 = arith.constant dense<0.000000e+00> : vector<16x64xf32>
    %109 = tpu.matmul %107, %108, %cst_37 {dimension_numbers = #tpu.dot_dimension_numbers<[1], [0], [0], [1], [0, 0, 1, 1], [], []>} : vector<16x32xf32>, vector<32x64xf32>, vector<16x64xf32> -> vector<16x64xf32>
    %c8 = arith.constant 8 : index
    %c0_38 = arith.constant 0 : index
    %110 = vector.load %arg4[%c8, %c0_38] : memref<18x128xf32, #tpu.memory_space<vmem>>, vector<1x64xf32>
    %111 = vector.broadcast %110 : vector<1x64xf32> to vector<16x64xf32>
    %112 = arith.addf %109, %111 : vector<16x64xf32>
    %113 = arith.mulf %112, %112 : vector<16x64xf32>
    %114 = arith.mulf %112, %113 : vector<16x64xf32>
    %cst_39 = arith.constant 4.471500e-02 : f32
    %115 = vector.broadcast %cst_39 : f32 to vector<16x64xf32>
    %116 = arith.mulf %115, %114 : vector<16x64xf32>
    %117 = arith.addf %112, %116 : vector<16x64xf32>
    %cst_40 = arith.constant 0.797884583 : f32
    %118 = vector.broadcast %cst_40 : f32 to vector<16x64xf32>
    %119 = arith.mulf %118, %117 : vector<16x64xf32>
    %120 = math.tanh %119 : vector<16x64xf32>
    %cst_41 = arith.constant 1.000000e+00 : f32
    %121 = vector.broadcast %cst_41 : f32 to vector<16x64xf32>
    %122 = arith.addf %121, %120 : vector<16x64xf32>
    %cst_42 = arith.constant 5.000000e-01 : f32
    %123 = vector.broadcast %cst_42 : f32 to vector<16x64xf32>
    %124 = arith.mulf %123, %122 : vector<16x64xf32>
    %125 = arith.mulf %112, %124 : vector<16x64xf32>
    %c0_43 = arith.constant 0 : index
    %c0_44 = arith.constant 0 : index
    %126 = vector.load %arg3[%c0_43, %c0_44] : memref<248x128xf32, #tpu.memory_space<vmem>>, vector<64x32xf32>
    %cst_45 = arith.constant dense<0.000000e+00> : vector<16x32xf32>
    %127 = tpu.matmul %125, %126, %cst_45 {dimension_numbers = #tpu.dot_dimension_numbers<[1], [0], [0], [1], [0, 0, 1, 1], [], []>} : vector<16x64xf32>, vector<64x32xf32>, vector<16x32xf32> -> vector<16x32xf32>
    %c9 = arith.constant 9 : index
    %c0_46 = arith.constant 0 : index
    %128 = vector.load %arg4[%c9, %c0_46] : memref<18x128xf32, #tpu.memory_space<vmem>>, vector<1x32xf32>
    %129 = vector.broadcast %128 : vector<1x32xf32> to vector<16x32xf32>
    %130 = arith.addf %127, %129 : vector<16x32xf32>
    %131 = arith.addf %107, %130 : vector<16x32xf32>
    %c10 = arith.constant 10 : index
    %c0_47 = arith.constant 0 : index
    %132 = vector.load %arg4[%c10, %c0_47] : memref<18x128xf32, #tpu.memory_space<vmem>>, vector<1x32xf32>
    %c11 = arith.constant 11 : index
    %c0_48 = arith.constant 0 : index
    %133 = vector.load %arg4[%c11, %c0_48] : memref<18x128xf32, #tpu.memory_space<vmem>>, vector<1x32xf32>
    %cst_49 = arith.constant dense<0.000000e+00> : vector<16xf32>
    %134 = vector.multi_reduction <add>, %131, %cst_49 [1] : vector<16x32xf32> to vector<16xf32>
    %135 = vector.shape_cast %134 : vector<16xf32> to vector<16x1xf32>
    %cst_50 = arith.constant 3.200000e+01 : f32
    %136 = vector.broadcast %cst_50 : f32 to vector<16x1xf32>
    %137 = arith.divf %135, %136 : vector<16x1xf32>
    %138 = vector.broadcast %137 : vector<16x1xf32> to vector<16x32xf32>
    %139 = arith.subf %131, %138 : vector<16x32xf32>
    %140 = arith.mulf %139, %139 : vector<16x32xf32>
    %cst_51 = arith.constant dense<0.000000e+00> : vector<16xf32>
    %141 = vector.multi_reduction <add>, %140, %cst_51 [1] : vector<16x32xf32> to vector<16xf32>
    %142 = vector.shape_cast %141 : vector<16xf32> to vector<16x1xf32>
    %cst_52 = arith.constant 3.200000e+01 : f32
    %143 = vector.broadcast %cst_52 : f32 to vector<16x1xf32>
    %144 = arith.divf %142, %143 : vector<16x1xf32>
    %145 = vector.broadcast %137 : vector<16x1xf32> to vector<16x32xf32>
    %146 = arith.subf %131, %145 : vector<16x32xf32>
    %cst_53 = arith.constant 9.99999996E-13 : f32
    %147 = vector.broadcast %cst_53 : f32 to vector<16x1xf32>
    %148 = arith.addf %144, %147 : vector<16x1xf32>
    %149 = math.rsqrt %148 : vector<16x1xf32>
    %150 = vector.broadcast %149 : vector<16x1xf32> to vector<16x32xf32>
    %151 = arith.mulf %146, %150 : vector<16x32xf32>
    %152 = vector.broadcast %132 : vector<1x32xf32> to vector<16x32xf32>
    %153 = arith.mulf %151, %152 : vector<16x32xf32>
    %154 = vector.broadcast %133 : vector<1x32xf32> to vector<16x32xf32>
    %155 = arith.addf %153, %154 : vector<16x32xf32>
    %c0_54 = arith.constant 0 : index
    %c640 = arith.constant 640 : index
    %156 = vector.load %arg2[%c0_54, %c640] : memref<32x1536xf32, #tpu.memory_space<vmem>>, vector<32x896xf32>
    %cst_55 = arith.constant dense<0.000000e+00> : vector<16x896xf32>
    %157 = tpu.matmul %155, %156, %cst_55 {dimension_numbers = #tpu.dot_dimension_numbers<[1], [0], [0], [1], [0, 0, 1, 1], [], []>} : vector<16x32xf32>, vector<32x896xf32>, vector<16x896xf32> -> vector<16x896xf32>
    %158 = vector.extract_strided_slice %157 {offsets = [0, 0], sizes = [16, 48], strides = [1, 1]} : vector<16x896xf32> to vector<16x48xf32>
    %c12 = arith.constant 12 : index
    %c0_56 = arith.constant 0 : index
    %159 = vector.load %arg4[%c12, %c0_56] : memref<18x128xf32, #tpu.memory_space<vmem>>, vector<1x48xf32>
    %160 = vector.broadcast %159 : vector<1x48xf32> to vector<16x48xf32>
    %161 = arith.addf %158, %160 : vector<16x48xf32>
    %162 = vector.shape_cast %161 : vector<16x48xf32> to vector<2x8x48xf32>
    %c64 = arith.constant 64 : index
    %c0_57 = arith.constant 0 : index
    %163 = vector.load %arg3[%c64, %c0_57] : memref<248x128xf32, #tpu.memory_space<vmem>>, vector<16x48xf32>
    %c13 = arith.constant 13 : index
    %c0_58 = arith.constant 0 : index
    %164 = vector.load %arg4[%c13, %c0_58] : memref<18x128xf32, #tpu.memory_space<vmem>>, vector<1x48xf32>
    %cst_59 = arith.constant 0.000000e+00 : f32
    %165 = vector.broadcast %cst_59 : f32 to vector<2x16xf32>
    %cst_60 = arith.constant dense<0.000000e+00> : vector<2x48xf32>
    %166 = tpu.matmul %165, %163, %cst_60 {dimension_numbers = #tpu.dot_dimension_numbers<[1], [0], [0], [1], [0, 0, 1, 1], [], []>} : vector<2x16xf32>, vector<16x48xf32>, vector<2x48xf32> -> vector<2x48xf32>
    %167 = vector.broadcast %164 : vector<1x48xf32> to vector<2x48xf32>
    %168 = arith.addf %166, %167 : vector<2x48xf32>
    %169 = vector.extract_strided_slice %162 {offsets = [0, 0, 0], sizes = [2, 1, 48], strides = [1, 1, 1]} : vector<2x8x48xf32> to vector<2x1x48xf32>
    %170 = vector.shape_cast %169 : vector<2x1x48xf32> to vector<2x48xf32>
    %171 = vector.extract_strided_slice %170 {offsets = [0, 0], sizes = [2, 32], strides = [1, 1]} : vector<2x48xf32> to vector<2x32xf32>
    %172 = vector.extract_strided_slice %168 {offsets = [0, 0], sizes = [2, 32], strides = [1, 1]} : vector<2x48xf32> to vector<2x32xf32>
    %173 = arith.addf %171, %172 : vector<2x32xf32>
    %174 = arith.negf %173 : vector<2x32xf32>
    %175 = math.exp %174 : vector<2x32xf32>
    %cst_61 = arith.constant 1.000000e+00 : f32
    %176 = vector.broadcast %cst_61 : f32 to vector<2x32xf32>
    %177 = arith.addf %176, %175 : vector<2x32xf32>
    %178 = arith.divf %176, %177 : vector<2x32xf32>
    %179 = vector.extract_strided_slice %178 {offsets = [0, 0], sizes = [2, 16], strides = [1, 1]} : vector<2x32xf32> to vector<2x16xf32>
    %180 = vector.extract_strided_slice %178 {offsets = [0, 16], sizes = [2, 16], strides = [1, 1]} : vector<2x32xf32> to vector<2x16xf32>
    %181 = vector.extract_strided_slice %170 {offsets = [0, 32], sizes = [2, 16], strides = [1, 1]} : vector<2x48xf32> to vector<2x16xf32>
    %182 = vector.extract_strided_slice %168 {offsets = [0, 32], sizes = [2, 16], strides = [1, 1]} : vector<2x48xf32> to vector<2x16xf32>
    %183 = arith.mulf %179, %182 : vector<2x16xf32>
    %184 = arith.addf %181, %183 : vector<2x16xf32>
    %185 = math.tanh %184 : vector<2x16xf32>
    %cst_62 = arith.constant 1.000000e+00 : f32
    %186 = vector.broadcast %cst_62 : f32 to vector<2x16xf32>
    %187 = arith.subf %186, %180 : vector<2x16xf32>
    %188 = arith.mulf %187, %185 : vector<2x16xf32>
    %189 = arith.mulf %180, %165 : vector<2x16xf32>
    %190 = arith.addf %188, %189 : vector<2x16xf32>
    %cst_63 = arith.constant dense<0.000000e+00> : vector<2x48xf32>
    %191 = tpu.matmul %190, %163, %cst_63 {dimension_numbers = #tpu.dot_dimension_numbers<[1], [0], [0], [1], [0, 0, 1, 1], [], []>} : vector<2x16xf32>, vector<16x48xf32>, vector<2x48xf32> -> vector<2x48xf32>
    %192 = vector.broadcast %164 : vector<1x48xf32> to vector<2x48xf32>
    %193 = arith.addf %191, %192 : vector<2x48xf32>
    %194 = vector.extract_strided_slice %162 {offsets = [0, 1, 0], sizes = [2, 1, 48], strides = [1, 1, 1]} : vector<2x8x48xf32> to vector<2x1x48xf32>
    %195 = vector.shape_cast %194 : vector<2x1x48xf32> to vector<2x48xf32>
    %196 = vector.extract_strided_slice %195 {offsets = [0, 0], sizes = [2, 32], strides = [1, 1]} : vector<2x48xf32> to vector<2x32xf32>
    %197 = vector.extract_strided_slice %193 {offsets = [0, 0], sizes = [2, 32], strides = [1, 1]} : vector<2x48xf32> to vector<2x32xf32>
    %198 = arith.addf %196, %197 : vector<2x32xf32>
    %199 = arith.negf %198 : vector<2x32xf32>
    %200 = math.exp %199 : vector<2x32xf32>
    %cst_64 = arith.constant 1.000000e+00 : f32
    %201 = vector.broadcast %cst_64 : f32 to vector<2x32xf32>
    %202 = arith.addf %201, %200 : vector<2x32xf32>
    %203 = arith.divf %201, %202 : vector<2x32xf32>
    %204 = vector.extract_strided_slice %203 {offsets = [0, 0], sizes = [2, 16], strides = [1, 1]} : vector<2x32xf32> to vector<2x16xf32>
    %205 = vector.extract_strided_slice %203 {offsets = [0, 16], sizes = [2, 16], strides = [1, 1]} : vector<2x32xf32> to vector<2x16xf32>
    %206 = vector.extract_strided_slice %195 {offsets = [0, 32], sizes = [2, 16], strides = [1, 1]} : vector<2x48xf32> to vector<2x16xf32>
    %207 = vector.extract_strided_slice %193 {offsets = [0, 32], sizes = [2, 16], strides = [1, 1]} : vector<2x48xf32> to vector<2x16xf32>
    %208 = arith.mulf %204, %207 : vector<2x16xf32>
    %209 = arith.addf %206, %208 : vector<2x16xf32>
    %210 = math.tanh %209 : vector<2x16xf32>
    %cst_65 = arith.constant 1.000000e+00 : f32
    %211 = vector.broadcast %cst_65 : f32 to vector<2x16xf32>
    %212 = arith.subf %211, %205 : vector<2x16xf32>
    %213 = arith.mulf %212, %210 : vector<2x16xf32>
    %214 = arith.mulf %205, %190 : vector<2x16xf32>
    %215 = arith.addf %213, %214 : vector<2x16xf32>
    %cst_66 = arith.constant dense<0.000000e+00> : vector<2x48xf32>
    %216 = tpu.matmul %215, %163, %cst_66 {dimension_numbers = #tpu.dot_dimension_numbers<[1], [0], [0], [1], [0, 0, 1, 1], [], []>} : vector<2x16xf32>, vector<16x48xf32>, vector<2x48xf32> -> vector<2x48xf32>
    %217 = vector.broadcast %164 : vector<1x48xf32> to vector<2x48xf32>
    %218 = arith.addf %216, %217 : vector<2x48xf32>
    %219 = vector.extract_strided_slice %162 {offsets = [0, 2, 0], sizes = [2, 1, 48], strides = [1, 1, 1]} : vector<2x8x48xf32> to vector<2x1x48xf32>
    %220 = vector.shape_cast %219 : vector<2x1x48xf32> to vector<2x48xf32>
    %221 = vector.extract_strided_slice %220 {offsets = [0, 0], sizes = [2, 32], strides = [1, 1]} : vector<2x48xf32> to vector<2x32xf32>
    %222 = vector.extract_strided_slice %218 {offsets = [0, 0], sizes = [2, 32], strides = [1, 1]} : vector<2x48xf32> to vector<2x32xf32>
    %223 = arith.addf %221, %222 : vector<2x32xf32>
    %224 = arith.negf %223 : vector<2x32xf32>
    %225 = math.exp %224 : vector<2x32xf32>
    %cst_67 = arith.constant 1.000000e+00 : f32
    %226 = vector.broadcast %cst_67 : f32 to vector<2x32xf32>
    %227 = arith.addf %226, %225 : vector<2x32xf32>
    %228 = arith.divf %226, %227 : vector<2x32xf32>
    %229 = vector.extract_strided_slice %228 {offsets = [0, 0], sizes = [2, 16], strides = [1, 1]} : vector<2x32xf32> to vector<2x16xf32>
    %230 = vector.extract_strided_slice %228 {offsets = [0, 16], sizes = [2, 16], strides = [1, 1]} : vector<2x32xf32> to vector<2x16xf32>
    %231 = vector.extract_strided_slice %220 {offsets = [0, 32], sizes = [2, 16], strides = [1, 1]} : vector<2x48xf32> to vector<2x16xf32>
    %232 = vector.extract_strided_slice %218 {offsets = [0, 32], sizes = [2, 16], strides = [1, 1]} : vector<2x48xf32> to vector<2x16xf32>
    %233 = arith.mulf %229, %232 : vector<2x16xf32>
    %234 = arith.addf %231, %233 : vector<2x16xf32>
    %235 = math.tanh %234 : vector<2x16xf32>
    %cst_68 = arith.constant 1.000000e+00 : f32
    %236 = vector.broadcast %cst_68 : f32 to vector<2x16xf32>
    %237 = arith.subf %236, %230 : vector<2x16xf32>
    %238 = arith.mulf %237, %235 : vector<2x16xf32>
    %239 = arith.mulf %230, %215 : vector<2x16xf32>
    %240 = arith.addf %238, %239 : vector<2x16xf32>
    %cst_69 = arith.constant dense<0.000000e+00> : vector<2x48xf32>
    %241 = tpu.matmul %240, %163, %cst_69 {dimension_numbers = #tpu.dot_dimension_numbers<[1], [0], [0], [1], [0, 0, 1, 1], [], []>} : vector<2x16xf32>, vector<16x48xf32>, vector<2x48xf32> -> vector<2x48xf32>
    %242 = vector.broadcast %164 : vector<1x48xf32> to vector<2x48xf32>
    %243 = arith.addf %241, %242 : vector<2x48xf32>
    %244 = vector.extract_strided_slice %162 {offsets = [0, 3, 0], sizes = [2, 1, 48], strides = [1, 1, 1]} : vector<2x8x48xf32> to vector<2x1x48xf32>
    %245 = vector.shape_cast %244 : vector<2x1x48xf32> to vector<2x48xf32>
    %246 = vector.extract_strided_slice %245 {offsets = [0, 0], sizes = [2, 32], strides = [1, 1]} : vector<2x48xf32> to vector<2x32xf32>
    %247 = vector.extract_strided_slice %243 {offsets = [0, 0], sizes = [2, 32], strides = [1, 1]} : vector<2x48xf32> to vector<2x32xf32>
    %248 = arith.addf %246, %247 : vector<2x32xf32>
    %249 = arith.negf %248 : vector<2x32xf32>
    %250 = math.exp %249 : vector<2x32xf32>
    %cst_70 = arith.constant 1.000000e+00 : f32
    %251 = vector.broadcast %cst_70 : f32 to vector<2x32xf32>
    %252 = arith.addf %251, %250 : vector<2x32xf32>
    %253 = arith.divf %251, %252 : vector<2x32xf32>
    %254 = vector.extract_strided_slice %253 {offsets = [0, 0], sizes = [2, 16], strides = [1, 1]} : vector<2x32xf32> to vector<2x16xf32>
    %255 = vector.extract_strided_slice %253 {offsets = [0, 16], sizes = [2, 16], strides = [1, 1]} : vector<2x32xf32> to vector<2x16xf32>
    %256 = vector.extract_strided_slice %245 {offsets = [0, 32], sizes = [2, 16], strides = [1, 1]} : vector<2x48xf32> to vector<2x16xf32>
    %257 = vector.extract_strided_slice %243 {offsets = [0, 32], sizes = [2, 16], strides = [1, 1]} : vector<2x48xf32> to vector<2x16xf32>
    %258 = arith.mulf %254, %257 : vector<2x16xf32>
    %259 = arith.addf %256, %258 : vector<2x16xf32>
    %260 = math.tanh %259 : vector<2x16xf32>
    %cst_71 = arith.constant 1.000000e+00 : f32
    %261 = vector.broadcast %cst_71 : f32 to vector<2x16xf32>
    %262 = arith.subf %261, %255 : vector<2x16xf32>
    %263 = arith.mulf %262, %260 : vector<2x16xf32>
    %264 = arith.mulf %255, %240 : vector<2x16xf32>
    %265 = arith.addf %263, %264 : vector<2x16xf32>
    %cst_72 = arith.constant dense<0.000000e+00> : vector<2x48xf32>
    %266 = tpu.matmul %265, %163, %cst_72 {dimension_numbers = #tpu.dot_dimension_numbers<[1], [0], [0], [1], [0, 0, 1, 1], [], []>} : vector<2x16xf32>, vector<16x48xf32>, vector<2x48xf32> -> vector<2x48xf32>
    %267 = vector.broadcast %164 : vector<1x48xf32> to vector<2x48xf32>
    %268 = arith.addf %266, %267 : vector<2x48xf32>
    %269 = vector.extract_strided_slice %162 {offsets = [0, 4, 0], sizes = [2, 1, 48], strides = [1, 1, 1]} : vector<2x8x48xf32> to vector<2x1x48xf32>
    %270 = vector.shape_cast %269 : vector<2x1x48xf32> to vector<2x48xf32>
    %271 = vector.extract_strided_slice %270 {offsets = [0, 0], sizes = [2, 32], strides = [1, 1]} : vector<2x48xf32> to vector<2x32xf32>
    %272 = vector.extract_strided_slice %268 {offsets = [0, 0], sizes = [2, 32], strides = [1, 1]} : vector<2x48xf32> to vector<2x32xf32>
    %273 = arith.addf %271, %272 : vector<2x32xf32>
    %274 = arith.negf %273 : vector<2x32xf32>
    %275 = math.exp %274 : vector<2x32xf32>
    %cst_73 = arith.constant 1.000000e+00 : f32
    %276 = vector.broadcast %cst_73 : f32 to vector<2x32xf32>
    %277 = arith.addf %276, %275 : vector<2x32xf32>
    %278 = arith.divf %276, %277 : vector<2x32xf32>
    %279 = vector.extract_strided_slice %278 {offsets = [0, 0], sizes = [2, 16], strides = [1, 1]} : vector<2x32xf32> to vector<2x16xf32>
    %280 = vector.extract_strided_slice %278 {offsets = [0, 16], sizes = [2, 16], strides = [1, 1]} : vector<2x32xf32> to vector<2x16xf32>
    %281 = vector.extract_strided_slice %270 {offsets = [0, 32], sizes = [2, 16], strides = [1, 1]} : vector<2x48xf32> to vector<2x16xf32>
    %282 = vector.extract_strided_slice %268 {offsets = [0, 32], sizes = [2, 16], strides = [1, 1]} : vector<2x48xf32> to vector<2x16xf32>
    %283 = arith.mulf %279, %282 : vector<2x16xf32>
    %284 = arith.addf %281, %283 : vector<2x16xf32>
    %285 = math.tanh %284 : vector<2x16xf32>
    %cst_74 = arith.constant 1.000000e+00 : f32
    %286 = vector.broadcast %cst_74 : f32 to vector<2x16xf32>
    %287 = arith.subf %286, %280 : vector<2x16xf32>
    %288 = arith.mulf %287, %285 : vector<2x16xf32>
    %289 = arith.mulf %280, %265 : vector<2x16xf32>
    %290 = arith.addf %288, %289 : vector<2x16xf32>
    %cst_75 = arith.constant dense<0.000000e+00> : vector<2x48xf32>
    %291 = tpu.matmul %290, %163, %cst_75 {dimension_numbers = #tpu.dot_dimension_numbers<[1], [0], [0], [1], [0, 0, 1, 1], [], []>} : vector<2x16xf32>, vector<16x48xf32>, vector<2x48xf32> -> vector<2x48xf32>
    %292 = vector.broadcast %164 : vector<1x48xf32> to vector<2x48xf32>
    %293 = arith.addf %291, %292 : vector<2x48xf32>
    %294 = vector.extract_strided_slice %162 {offsets = [0, 5, 0], sizes = [2, 1, 48], strides = [1, 1, 1]} : vector<2x8x48xf32> to vector<2x1x48xf32>
    %295 = vector.shape_cast %294 : vector<2x1x48xf32> to vector<2x48xf32>
    %296 = vector.extract_strided_slice %295 {offsets = [0, 0], sizes = [2, 32], strides = [1, 1]} : vector<2x48xf32> to vector<2x32xf32>
    %297 = vector.extract_strided_slice %293 {offsets = [0, 0], sizes = [2, 32], strides = [1, 1]} : vector<2x48xf32> to vector<2x32xf32>
    %298 = arith.addf %296, %297 : vector<2x32xf32>
    %299 = arith.negf %298 : vector<2x32xf32>
    %300 = math.exp %299 : vector<2x32xf32>
    %cst_76 = arith.constant 1.000000e+00 : f32
    %301 = vector.broadcast %cst_76 : f32 to vector<2x32xf32>
    %302 = arith.addf %301, %300 : vector<2x32xf32>
    %303 = arith.divf %301, %302 : vector<2x32xf32>
    %304 = vector.extract_strided_slice %303 {offsets = [0, 0], sizes = [2, 16], strides = [1, 1]} : vector<2x32xf32> to vector<2x16xf32>
    %305 = vector.extract_strided_slice %303 {offsets = [0, 16], sizes = [2, 16], strides = [1, 1]} : vector<2x32xf32> to vector<2x16xf32>
    %306 = vector.extract_strided_slice %295 {offsets = [0, 32], sizes = [2, 16], strides = [1, 1]} : vector<2x48xf32> to vector<2x16xf32>
    %307 = vector.extract_strided_slice %293 {offsets = [0, 32], sizes = [2, 16], strides = [1, 1]} : vector<2x48xf32> to vector<2x16xf32>
    %308 = arith.mulf %304, %307 : vector<2x16xf32>
    %309 = arith.addf %306, %308 : vector<2x16xf32>
    %310 = math.tanh %309 : vector<2x16xf32>
    %cst_77 = arith.constant 1.000000e+00 : f32
    %311 = vector.broadcast %cst_77 : f32 to vector<2x16xf32>
    %312 = arith.subf %311, %305 : vector<2x16xf32>
    %313 = arith.mulf %312, %310 : vector<2x16xf32>
    %314 = arith.mulf %305, %290 : vector<2x16xf32>
    %315 = arith.addf %313, %314 : vector<2x16xf32>
    %cst_78 = arith.constant dense<0.000000e+00> : vector<2x48xf32>
    %316 = tpu.matmul %315, %163, %cst_78 {dimension_numbers = #tpu.dot_dimension_numbers<[1], [0], [0], [1], [0, 0, 1, 1], [], []>} : vector<2x16xf32>, vector<16x48xf32>, vector<2x48xf32> -> vector<2x48xf32>
    %317 = vector.broadcast %164 : vector<1x48xf32> to vector<2x48xf32>
    %318 = arith.addf %316, %317 : vector<2x48xf32>
    %319 = vector.extract_strided_slice %162 {offsets = [0, 6, 0], sizes = [2, 1, 48], strides = [1, 1, 1]} : vector<2x8x48xf32> to vector<2x1x48xf32>
    %320 = vector.shape_cast %319 : vector<2x1x48xf32> to vector<2x48xf32>
    %321 = vector.extract_strided_slice %320 {offsets = [0, 0], sizes = [2, 32], strides = [1, 1]} : vector<2x48xf32> to vector<2x32xf32>
    %322 = vector.extract_strided_slice %318 {offsets = [0, 0], sizes = [2, 32], strides = [1, 1]} : vector<2x48xf32> to vector<2x32xf32>
    %323 = arith.addf %321, %322 : vector<2x32xf32>
    %324 = arith.negf %323 : vector<2x32xf32>
    %325 = math.exp %324 : vector<2x32xf32>
    %cst_79 = arith.constant 1.000000e+00 : f32
    %326 = vector.broadcast %cst_79 : f32 to vector<2x32xf32>
    %327 = arith.addf %326, %325 : vector<2x32xf32>
    %328 = arith.divf %326, %327 : vector<2x32xf32>
    %329 = vector.extract_strided_slice %328 {offsets = [0, 0], sizes = [2, 16], strides = [1, 1]} : vector<2x32xf32> to vector<2x16xf32>
    %330 = vector.extract_strided_slice %328 {offsets = [0, 16], sizes = [2, 16], strides = [1, 1]} : vector<2x32xf32> to vector<2x16xf32>
    %331 = vector.extract_strided_slice %320 {offsets = [0, 32], sizes = [2, 16], strides = [1, 1]} : vector<2x48xf32> to vector<2x16xf32>
    %332 = vector.extract_strided_slice %318 {offsets = [0, 32], sizes = [2, 16], strides = [1, 1]} : vector<2x48xf32> to vector<2x16xf32>
    %333 = arith.mulf %329, %332 : vector<2x16xf32>
    %334 = arith.addf %331, %333 : vector<2x16xf32>
    %335 = math.tanh %334 : vector<2x16xf32>
    %cst_80 = arith.constant 1.000000e+00 : f32
    %336 = vector.broadcast %cst_80 : f32 to vector<2x16xf32>
    %337 = arith.subf %336, %330 : vector<2x16xf32>
    %338 = arith.mulf %337, %335 : vector<2x16xf32>
    %339 = arith.mulf %330, %315 : vector<2x16xf32>
    %340 = arith.addf %338, %339 : vector<2x16xf32>
    %cst_81 = arith.constant dense<0.000000e+00> : vector<2x48xf32>
    %341 = tpu.matmul %340, %163, %cst_81 {dimension_numbers = #tpu.dot_dimension_numbers<[1], [0], [0], [1], [0, 0, 1, 1], [], []>} : vector<2x16xf32>, vector<16x48xf32>, vector<2x48xf32> -> vector<2x48xf32>
    %342 = vector.broadcast %164 : vector<1x48xf32> to vector<2x48xf32>
    %343 = arith.addf %341, %342 : vector<2x48xf32>
    %344 = vector.extract_strided_slice %162 {offsets = [0, 7, 0], sizes = [2, 1, 48], strides = [1, 1, 1]} : vector<2x8x48xf32> to vector<2x1x48xf32>
    %345 = vector.shape_cast %344 : vector<2x1x48xf32> to vector<2x48xf32>
    %346 = vector.extract_strided_slice %345 {offsets = [0, 0], sizes = [2, 32], strides = [1, 1]} : vector<2x48xf32> to vector<2x32xf32>
    %347 = vector.extract_strided_slice %343 {offsets = [0, 0], sizes = [2, 32], strides = [1, 1]} : vector<2x48xf32> to vector<2x32xf32>
    %348 = arith.addf %346, %347 : vector<2x32xf32>
    %349 = arith.negf %348 : vector<2x32xf32>
    %350 = math.exp %349 : vector<2x32xf32>
    %cst_82 = arith.constant 1.000000e+00 : f32
    %351 = vector.broadcast %cst_82 : f32 to vector<2x32xf32>
    %352 = arith.addf %351, %350 : vector<2x32xf32>
    %353 = arith.divf %351, %352 : vector<2x32xf32>
    %354 = vector.extract_strided_slice %353 {offsets = [0, 0], sizes = [2, 16], strides = [1, 1]} : vector<2x32xf32> to vector<2x16xf32>
    %355 = vector.extract_strided_slice %353 {offsets = [0, 16], sizes = [2, 16], strides = [1, 1]} : vector<2x32xf32> to vector<2x16xf32>
    %356 = vector.extract_strided_slice %345 {offsets = [0, 32], sizes = [2, 16], strides = [1, 1]} : vector<2x48xf32> to vector<2x16xf32>
    %357 = vector.extract_strided_slice %343 {offsets = [0, 32], sizes = [2, 16], strides = [1, 1]} : vector<2x48xf32> to vector<2x16xf32>
    %358 = arith.mulf %354, %357 : vector<2x16xf32>
    %359 = arith.addf %356, %358 : vector<2x16xf32>
    %360 = math.tanh %359 : vector<2x16xf32>
    %cst_83 = arith.constant 1.000000e+00 : f32
    %361 = vector.broadcast %cst_83 : f32 to vector<2x16xf32>
    %362 = arith.subf %361, %355 : vector<2x16xf32>
    %363 = arith.mulf %362, %360 : vector<2x16xf32>
    %364 = arith.mulf %355, %340 : vector<2x16xf32>
    %365 = arith.addf %363, %364 : vector<2x16xf32>
    %366 = vector.extract_strided_slice %157 {offsets = [0, 128], sizes = [16, 48], strides = [1, 1]} : vector<16x896xf32> to vector<16x48xf32>
    %367 = vector.shape_cast %366 : vector<16x48xf32> to vector<2x8x48xf32>
    %368 = vector.extract_strided_slice %367 {offsets = [0, 7, 0], sizes = [2, 1, 48], strides = [1, 1, 1]} : vector<2x8x48xf32> to vector<2x1x48xf32>
    %369 = vector.shape_cast %368 : vector<2x1x48xf32> to vector<2x48xf32>
    %c14 = arith.constant 14 : index
    %c0_84 = arith.constant 0 : index
    %370 = vector.load %arg4[%c14, %c0_84] : memref<18x128xf32, #tpu.memory_space<vmem>>, vector<1x48xf32>
    %371 = vector.broadcast %370 : vector<1x48xf32> to vector<2x48xf32>
    %372 = arith.addf %369, %371 : vector<2x48xf32>
    %c15 = arith.constant 15 : index
    %c0_85 = arith.constant 0 : index
    %373 = vector.load %arg4[%c15, %c0_85] : memref<18x128xf32, #tpu.memory_space<vmem>>, vector<1x48xf32>
    %cst_86 = arith.constant 0.000000e+00 : f32
    %374 = vector.broadcast %cst_86 : f32 to vector<2x16xf32>
    %375 = vector.extract_strided_slice %372 {offsets = [0, 0], sizes = [2, 32], strides = [1, 1]} : vector<2x48xf32> to vector<2x32xf32>
    %376 = vector.extract_strided_slice %373 {offsets = [0, 0], sizes = [1, 32], strides = [1, 1]} : vector<1x48xf32> to vector<1x32xf32>
    %377 = vector.broadcast %376 : vector<1x32xf32> to vector<2x32xf32>
    %378 = arith.addf %375, %377 : vector<2x32xf32>
    %379 = arith.negf %378 : vector<2x32xf32>
    %380 = math.exp %379 : vector<2x32xf32>
    %cst_87 = arith.constant 1.000000e+00 : f32
    %381 = vector.broadcast %cst_87 : f32 to vector<2x32xf32>
    %382 = arith.addf %381, %380 : vector<2x32xf32>
    %383 = arith.divf %381, %382 : vector<2x32xf32>
    %384 = vector.extract_strided_slice %383 {offsets = [0, 0], sizes = [2, 16], strides = [1, 1]} : vector<2x32xf32> to vector<2x16xf32>
    %385 = vector.extract_strided_slice %383 {offsets = [0, 16], sizes = [2, 16], strides = [1, 1]} : vector<2x32xf32> to vector<2x16xf32>
    %386 = vector.extract_strided_slice %372 {offsets = [0, 32], sizes = [2, 16], strides = [1, 1]} : vector<2x48xf32> to vector<2x16xf32>
    %387 = vector.extract_strided_slice %373 {offsets = [0, 32], sizes = [1, 16], strides = [1, 1]} : vector<1x48xf32> to vector<1x16xf32>
    %388 = vector.broadcast %387 : vector<1x16xf32> to vector<2x16xf32>
    %389 = arith.mulf %384, %388 : vector<2x16xf32>
    %390 = arith.addf %386, %389 : vector<2x16xf32>
    %391 = math.tanh %390 : vector<2x16xf32>
    %cst_88 = arith.constant 1.000000e+00 : f32
    %392 = vector.broadcast %cst_88 : f32 to vector<2x16xf32>
    %393 = arith.subf %392, %385 : vector<2x16xf32>
    %394 = arith.mulf %393, %391 : vector<2x16xf32>
    %395 = arith.mulf %385, %374 : vector<2x16xf32>
    %396 = arith.addf %394, %395 : vector<2x16xf32>
    %397 = vector.extract_strided_slice %157 {offsets = [0, 256], sizes = [16, 640], strides = [1, 1]} : vector<16x896xf32> to vector<16x640xf32>
    %398 = vector.shape_cast %397 : vector<16x640xf32> to vector<2x8x640xf32>
    %c16 = arith.constant 16 : index
    %c0_89 = arith.constant 0 : index
    %399 = vector.load %arg4[%c16, %c0_89] : memref<18x128xf32, #tpu.memory_space<vmem>>, vector<1x24xf32>
    %400 = vector.extract_strided_slice %398 {offsets = [0, 0, 0], sizes = [2, 6, 8], strides = [1, 1, 1]} : vector<2x8x640xf32> to vector<2x6x8xf32>
    %401 = vector.extract_strided_slice %398 {offsets = [0, 1, 128], sizes = [2, 6, 8], strides = [1, 1, 1]} : vector<2x8x640xf32> to vector<2x6x8xf32>
    %402 = arith.addf %400, %401 : vector<2x6x8xf32>
    %403 = vector.extract_strided_slice %398 {offsets = [0, 2, 256], sizes = [2, 6, 8], strides = [1, 1, 1]} : vector<2x8x640xf32> to vector<2x6x8xf32>
    %404 = arith.addf %402, %403 : vector<2x6x8xf32>
    %405 = vector.extract_strided_slice %399 {offsets = [0, 0], sizes = [1, 8], strides = [1, 1]} : vector<1x24xf32> to vector<1x8xf32>
    %406 = vector.shape_cast %405 : vector<1x8xf32> to vector<1x1x8xf32>
    %407 = vector.broadcast %406 : vector<1x1x8xf32> to vector<2x6x8xf32>
    %408 = arith.addf %404, %407 : vector<2x6x8xf32>
    %cst_90 = arith.constant 0.000000e+00 : f32
    %409 = vector.broadcast %cst_90 : f32 to vector<2x6x8xf32>
    %410 = arith.maximumf %408, %409 : vector<2x6x8xf32>
    %cst_91 = arith.constant dense<0xFF800000> : vector<2x8xf32>
    %411 = vector.multi_reduction <maximumf>, %410, %cst_91 [1] : vector<2x6x8xf32> to vector<2x8xf32>
    %412 = vector.extract_strided_slice %398 {offsets = [0, 0, 8], sizes = [2, 5, 8], strides = [1, 1, 1]} : vector<2x8x640xf32> to vector<2x5x8xf32>
    %413 = vector.extract_strided_slice %398 {offsets = [0, 1, 136], sizes = [2, 5, 8], strides = [1, 1, 1]} : vector<2x8x640xf32> to vector<2x5x8xf32>
    %414 = arith.addf %412, %413 : vector<2x5x8xf32>
    %415 = vector.extract_strided_slice %398 {offsets = [0, 2, 264], sizes = [2, 5, 8], strides = [1, 1, 1]} : vector<2x8x640xf32> to vector<2x5x8xf32>
    %416 = arith.addf %414, %415 : vector<2x5x8xf32>
    %417 = vector.extract_strided_slice %398 {offsets = [0, 3, 392], sizes = [2, 5, 8], strides = [1, 1, 1]} : vector<2x8x640xf32> to vector<2x5x8xf32>
    %418 = arith.addf %416, %417 : vector<2x5x8xf32>
    %419 = vector.extract_strided_slice %399 {offsets = [0, 8], sizes = [1, 8], strides = [1, 1]} : vector<1x24xf32> to vector<1x8xf32>
    %420 = vector.shape_cast %419 : vector<1x8xf32> to vector<1x1x8xf32>
    %421 = vector.broadcast %420 : vector<1x1x8xf32> to vector<2x5x8xf32>
    %422 = arith.addf %418, %421 : vector<2x5x8xf32>
    %cst_92 = arith.constant 0.000000e+00 : f32
    %423 = vector.broadcast %cst_92 : f32 to vector<2x5x8xf32>
    %424 = arith.maximumf %422, %423 : vector<2x5x8xf32>
    %cst_93 = arith.constant dense<0xFF800000> : vector<2x8xf32>
    %425 = vector.multi_reduction <maximumf>, %424, %cst_93 [1] : vector<2x5x8xf32> to vector<2x8xf32>
    %426 = vector.extract_strided_slice %398 {offsets = [0, 0, 16], sizes = [2, 4, 8], strides = [1, 1, 1]} : vector<2x8x640xf32> to vector<2x4x8xf32>
    %427 = vector.extract_strided_slice %398 {offsets = [0, 1, 144], sizes = [2, 4, 8], strides = [1, 1, 1]} : vector<2x8x640xf32> to vector<2x4x8xf32>
    %428 = arith.addf %426, %427 : vector<2x4x8xf32>
    %429 = vector.extract_strided_slice %398 {offsets = [0, 2, 272], sizes = [2, 4, 8], strides = [1, 1, 1]} : vector<2x8x640xf32> to vector<2x4x8xf32>
    %430 = arith.addf %428, %429 : vector<2x4x8xf32>
    %431 = vector.extract_strided_slice %398 {offsets = [0, 3, 400], sizes = [2, 4, 8], strides = [1, 1, 1]} : vector<2x8x640xf32> to vector<2x4x8xf32>
    %432 = arith.addf %430, %431 : vector<2x4x8xf32>
    %433 = vector.extract_strided_slice %398 {offsets = [0, 4, 528], sizes = [2, 4, 8], strides = [1, 1, 1]} : vector<2x8x640xf32> to vector<2x4x8xf32>
    %434 = arith.addf %432, %433 : vector<2x4x8xf32>
    %435 = vector.extract_strided_slice %399 {offsets = [0, 16], sizes = [1, 8], strides = [1, 1]} : vector<1x24xf32> to vector<1x8xf32>
    %436 = vector.shape_cast %435 : vector<1x8xf32> to vector<1x1x8xf32>
    %437 = vector.broadcast %436 : vector<1x1x8xf32> to vector<2x4x8xf32>
    %438 = arith.addf %434, %437 : vector<2x4x8xf32>
    %cst_94 = arith.constant 0.000000e+00 : f32
    %439 = vector.broadcast %cst_94 : f32 to vector<2x4x8xf32>
    %440 = arith.maximumf %438, %439 : vector<2x4x8xf32>
    %cst_95 = arith.constant dense<0xFF800000> : vector<2x8xf32>
    %441 = vector.multi_reduction <maximumf>, %440, %cst_95 [1] : vector<2x4x8xf32> to vector<2x8xf32>
    %442 = tpu.concatenate %411, %425, %441 in 1 : vector<2x8xf32>, vector<2x8xf32>, vector<2x8xf32> -> vector<2x24xf32>
    %443 = tpu.concatenate %365, %396, %442 in 1 : vector<2x16xf32>, vector<2x16xf32>, vector<2x24xf32> -> vector<2x56xf32>
    %c80 = arith.constant 80 : index
    %c0_96 = arith.constant 0 : index
    %444 = vector.load %arg3[%c80, %c0_96] : memref<248x128xf32, #tpu.memory_space<vmem>>, vector<56x2xf32>
    %cst_97 = arith.constant dense<0.000000e+00> : vector<2x2xf32>
    %445 = tpu.matmul %443, %444, %cst_97 {dimension_numbers = #tpu.dot_dimension_numbers<[1], [0], [0], [1], [0, 0, 1, 1], [], []>} : vector<2x56xf32>, vector<56x2xf32>, vector<2x2xf32> -> vector<2x2xf32>
    %c17 = arith.constant 17 : index
    %c0_98 = arith.constant 0 : index
    %446 = vector.load %arg4[%c17, %c0_98] : memref<18x128xf32, #tpu.memory_space<vmem>>, vector<1x2xf32>
    %447 = vector.broadcast %446 : vector<1x2xf32> to vector<2x2xf32>
    %448 = arith.addf %445, %447 : vector<2x2xf32>
    %c0_99 = arith.constant 0 : index
    %c0_100 = arith.constant 0 : index
    %449 = vector.load %arg5[%c0_99, %c0_100] : memref<2x2xf32, #tpu.memory_space<vmem>>, vector<2x2xf32>
    tpu.vector_store %arg5[%c0_99, %c0_100], %448 {strides = array<i32>} : memref<2x2xf32, #tpu.memory_space<vmem>>, vector<2x2xf32>,
    return
  }
}

</mosaic_0001>

<bundles_post_ra>
// kernel: _lambda_.1
= control target key start
LH: loop header
LB: loop body
LE: loop exit
PB: predicated region body
PF: predicated region fallthrough
CT: control target
= control target key end

     0   :  { %10 = vsyncpa [#allocation3], 0  ;;  %s4018_s0 = inlined_call_operand.vmem [shape: s32[16,1], index: 0, kind: input, shape index: {}]   ;;  %s4019_s1 = inlined_call_operand.vmem [shape: f32[2,8], index: 1, kind: input, shape index: {}]   ;;  %s4020_s2 = inlined_call_operand.hbm [shape: f32[32,1536], index: 2, kind: input, shape index: {}]   ;;  %s4021_s3 = inlined_call_operand.hbm [shape: f32[248,128], index: 3, kind: input, shape index: {}]   ;;  %s4022_s4 = inlined_call_operand.hbm [shape: f32[18,128], index: 4, kind: input, shape index: {}]   ;;  %s4023_s5 = inlined_call_operand.hbm [shape: f32[2,2], index: 5, kind: output, shape index: {}]  }
   0x1   :  { %11 = vsyncpa [#allocation6], 0 }
   0x2   :  { %12 = vsyncpa [#allocation4], 0  ;;  %s3620_s18 = smov [#allocation5]   ;;  %s3526_s22 = scalar_lea.hbm %s4021_s3, 3968 }
   0x3   :  { %s34_s19 = sshll.u32 %s3620_s18, 4  ;;  %p3527_p0 = scmp.ne.s32.totalorder %s4021_s3, %s3526_s22  ;;  %s35_s19 = int_to_ptr.vmem [resolvable:$true] %s34_s19 }
   0x4   :  { %p3530_p1 = scmp.lt.u32.totalorder %s3526_s22, %s4021_s3 }
   0x6   :  { %p3532_p2 = pnand %p3530_p1, %p3527_p0 }
   0x8   :  { %3535 = shalt.err (!%p3532_p2)
}
   0x9   :  { %s3536_s27 = scalar_lea.vmem %s35_s19, 3968  ;;  %p3541_p4 = scmp.lt.s32.totalorder %s35_s19, %s35_s19 }
   0xa   :  { %p3537_p3 = scmp.ne.s32.totalorder %s35_s19, %s3536_s27  ;;  %p3542_p5 = scmp.lt.s32.totalorder %s3536_s27, %s3536_s27 }
   0xc   :  { %p3543_p6 = por %p3542_p5, %p3541_p4 }
   0xe   :  { %p3544_p7 = pnand %p3543_p6, %p3537_p3 }
  0x10   :  { %3547 = shalt.err (!%p3544_p7)
}
  0x11   :  { %s3621_s28 = smov 128   ;;  %s3622_s29 = smov 8  }
  0x12   :  { %40 = dma.hbm_to_vmem [thread:$0]  %s4021_s3, 3968, %s35_s19, [#allocation6], %s3621_s28, %s3621_s28, %s3622_s29  }
  0x13   :  { %s3623_s7 = smov [#allocation2]   ;;  %s3548_s11 = scalar_lea.hbm %s4020_s2, 6144 }
  0x14   :  { %s22_s8 = sshll.u32 %s3623_s7, 4  ;;  %p3549_p8 = scmp.ne.s32.totalorder %s4020_s2, %s3548_s11  ;;  %s23_s8 = int_to_ptr.vmem [resolvable:$true] %s22_s8 }
  0x15   :  { %p3552_p9 = scmp.lt.u32.totalorder %s3548_s11, %s4020_s2 }
  0x17   :  { %p3554_p10 = pnand %p3552_p9, %p3549_p8 }
  0x19   :  { %3557 = shalt.err (!%p3554_p10)
}
  0x1a   :  { %s3558_s16 = scalar_lea.vmem %s23_s8, 6144  ;;  %p3563_p12 = scmp.lt.s32.totalorder %s23_s8, %s23_s8 }
  0x1b   :  { %p3559_p11 = scmp.ne.s32.totalorder %s23_s8, %s3558_s16  ;;  %p3564_p13 = scmp.lt.s32.totalorder %s3558_s16, %s3558_s16 }
  0x1d   :  { %p3565_p0 = por %p3564_p13, %p3563_p12 }
  0x1f   :  { %p3566_p1 = pnand %p3565_p0, %p3559_p11 }
  0x21   :  { %3569 = shalt.err (!%p3566_p1)
}
  0x22   :  { %s3624_s3 = smov 1536   ;;  %s3625_s17 = smov 96  }
  0x23   :  { %28 = dma.hbm_to_vmem [thread:$0]  %s4020_s2, 6144, %s23_s8, [#allocation3], %s3624_s3, %s3624_s3, %s3625_s17  }
  0x24   :  { %s3626_s20 = smov [#allocation7]   ;;  %s3570_s24 = scalar_lea.hbm %s4022_s4, 384 }
  0x25   :  { %s46_s21 = sshll.u32 %s3626_s20, 4  ;;  %p3571_p2 = scmp.ne.s32.totalorder %s4022_s4, %s3570_s24  ;;  %s47_s21 = int_to_ptr.vmem [resolvable:$true] %s46_s21 }
  0x26   :  { %p3574_p3 = scmp.lt.u32.totalorder %s3570_s24, %s4022_s4 }
  0x28   :  { %p3576_p4 = pnand %p3574_p3, %p3571_p2 }
  0x2a   :  { %3579 = shalt.err (!%p3576_p4)
}
  0x2b   :  { %s3580_s6 = scalar_lea.vmem %s47_s21, 384  ;;  %p3585_p6 = scmp.lt.s32.totalorder %s47_s21, %s47_s21 }
  0x2c   :  { %p3581_p5 = scmp.ne.s32.totalorder %s47_s21, %s3580_s6  ;;  %p3586_p7 = scmp.lt.s32.totalorder %s3580_s6, %s3580_s6 }
  0x2e   :  { %p3587_p8 = por %p3586_p7, %p3585_p6 }
  0x30   :  { %p3588_p9 = pnand %p3587_p8, %p3581_p5 }
  0x32   :  { %3591 = shalt.err (!%p3588_p9)
}
  0x33   :  { %52 = dma.hbm_to_vmem [thread:$0]  %s4022_s4, 384, %s47_s21, [#allocation6], %s3621_s28, %s3621_s28, %s3622_s29  }
  0x34   :  { %3614 = dma.done.wait [#allocation3], 6144  }
  0x35   :  { %3615 = vsyncadd [#allocation3], 4294961152 }
  0x36   :  { %3616 = dma.done.wait [#allocation6], 4352  }
  0x37   :  { %3617 = vsyncadd [#allocation6], 4294962944  ;;  %v3627_v0 = vmov 0   ;;  %v62_v1 = vld [vmem:[%s4018_s0] sm:$0xff]  ;;  %v78_v2 = vld [vmem:[#allocation5 + $0x88] sm:$0xff]  ;;  %v3628_v9 = vmov 0.0   ;;  %v64_v23 = vlaneseq }
  0x38   :  { %3393 = vset.pattern.permute.xlu0 %v3627_v0  ;;  %v79_v3 = vld [vmem:[#allocation5 + $0x90] sm:$0xff]  ;;  %v80_v4 = vld [vmem:[#allocation5 + $0x98] sm:$0xff]  ;;  %v81_v5 = vld [vmem:[#allocation5 + $0xa0] sm:$0xff]  ;;  %298 = vmatprep.mubr.f32.mxu1 %v3628_v9  ;;  %vm92_vm0 = vcmask 850944   ;;  %vm176_vm3 = vcmask 261120   ;;  %vm3629_vm4 = vmmov 0  }
  0x39   :  { %67 = vperm.xlu0 %3393, %v62_v1   ;;  %v63_v6 = vld [vmem:[%s4018_s0 + $0x8] sm:$0xff]  ;;  %v3241_v7 = vpack.c.bf16 %v79_v3, %v78_v2  ;;  %v3245_v8 = vpack.c.bf16 %v81_v5, %v80_v4  ;;  %v83_v11 = vld [vmem:[#allocation5 + $0xb0] sm:$0xff]  ;;  %v84_v13 = vld [vmem:[#allocation5 + $0xb8] sm:$0xff]  ;;  %v65_v24 = vand.u32 127, %v64_v23  ;;  %vm604_vm5 = vcmask 64512   ;;  %s3633_s28 = smov 112  }
  0x3a   :  { %v82_v10 = vld [vmem:[#allocation5 + $0xa8] sm:$0xff]  ;;  %v85_v14 = vld [vmem:[#allocation5 + $0xc0] sm:$0xff]  ;;  %v87_v17 = vld [vmem:[#allocation5 + $0xd0] sm:$0xff]  ;;  %vm1026_vm6 = vcmask 523264   ;;  %vm2680_vm7 = vcmask 62464   ;;  %vm2707_vm8 = vcmask 127040  }
  0x3b   :  { %3242 = vmatprep.subr.bf16.mxu0 %v3241_v7  ;;  %v3249_v12 = vpack.c.bf16 %v83_v11, %v82_v10  ;;  %v3253_v15 = vpack.c.bf16 %v85_v14, %v84_v13  ;;  %v86_v16 = vld [vmem:[#allocation5 + $0xc8] sm:$0xff]  ;;  %v88_v19 = vld [vmem:[#allocation5 + $0xd8] sm:$0xff]  ;;  %v89_v20 = vld [vmem:[#allocation5 + $0xe0] sm:$0xff]  ;;  %vm2734_vm9 = vcmask 191616   ;;  %vm1635_vm10 = vcmask 1041409   ;;  %s3634_s29 = smov [#allocation8]  }
  0x3c   :  { %3244 = vmatpush3.bf16.msra.mxu0 %v3241_v7  ;;  %v3257_v18 = vpack.c.bf16 %v87_v17, %v86_v16  ;;  %v3261_v21 = vpack.c.bf16 %v89_v20, %v88_v19  ;;  %v90_v22 = vld [vmem:[#allocation5 + $0xe8] sm:$0xff]  ;;  %v91_v29 = vld [vmem:[#allocation5 + $0xf0] sm:$0xff]  ;;  %v216_v48 = vld [vmem:[#allocation2] sm:$0xff]  ;;  %vm1504_vm11 = vcmask 130048   ;;  %vm2800_vm12 = vcmask 1040384   ;;  %s2885_s12 = sshll.u32 %s3634_s29, 4  ;;  %s2886_s12 = int_to_ptr.vmem [resolvable:$true] %s2885_s12 }
  0x3d   :  { %70 = vperm.xlu0 %3393, %v63_v6   ;;  %3246 = vmatprep.subr.bf16.mxu0 %v3245_v8  ;;  %v217_v46 = vld [vmem:[#allocation2 + $0x8] sm:$0xff]  ;;  %v219_v50 = vld [vmem:[#allocation2 + $0x60] sm:$0xff]  ;;  %v218_v58 = vld [vmem:[#allocation2 + $0x10] sm:$0xff]  ;;  %vm2804_vm13 = vcmask 457728   ;;  %vm2877_vm14 = vcmask 9216   ;;  %s3592_s13 = scalar_lea.vmem %s2886_s12, 32  ;;  %p3597_p11 = scmp.lt.s32.totalorder %s2886_s12, %s2886_s12 }
  0x3e   :  { %v220_v47 = vld [vmem:[#allocation2 + $0x68] sm:$0xff]  ;;  %v3267_v53 = vpack.c.bf16 %v219_v50, %v216_v48  ;;  %v222_v55 = vld [vmem:[#allocation2 + $0xc0] sm:$0xff]  ;;  %v221_v59 = vld [vmem:[#allocation2 + $0x70] sm:$0xff]  ;;  %p3593_p10 = scmp.ne.s32.totalorder %s2886_s12, %s3592_s13  ;;  %p3598_p12 = scmp.lt.s32.totalorder %s3592_s13, %s3592_s13 }
  0x3f   :  { %v3265_v49 = vpack.c.bf16 %v220_v47, %v217_v46  ;;  %v223_v51 = vld [vmem:[#allocation2 + $0xc8] sm:$0xff]  ;;  %v225_v56 = vld [vmem:[#allocation2 + $0x120] sm:$0xff]  ;;  %v3273_v60 = vpack.c.bf16 %v221_v59, %v218_v58  ;;  %v2899_v4 = vld [vmem:[#allocation7] ss:$0 sm:$0xff] }
  0x40   :  { %3248 = vmatpush3.bf16.msra.mxu0 %v3245_v8  ;;  %v226_v52 = vld [vmem:[#allocation2 + $0x128] sm:$0xff]  ;;  %v3271_v57 = vpack.c.bf16 %v225_v56, %v222_v55  ;;  %v2900_v6 = vld [vmem:[#allocation7 + $0x1] ss:$0 sm:$0xff]  ;;  %v224_v7 = vld [vmem:[#allocation2 + $0xd0] sm:$0xff]  ;;  %p3599_p13 = por %p3598_p12, %p3597_p11 }
  0x41   :  { %3250 = vmatprep.subr.bf16.mxu0 %v3249_v12  ;;  %v3269_v54 = vpack.c.bf16 %v226_v52, %v223_v51  ;;  %3266 = vmatprep.subr.bf16.mxu1 %v3265_v49  ;;  %v227_v8 = vld [vmem:[#allocation2 + $0x130] sm:$0xff]  ;;  %v2906_v17 = vld [vmem:[#allocation7 + $0x3] ss:$0 sm:$0xff]  ;;  %v2905_v20 = vld [vmem:[#allocation7 + $0x2] ss:$0 sm:$0xff] }
  0x42   :  { %3268 = vmatpush1.bf16.msra.mxu1 %v3267_v53  ;;  %v3277_v14 = vpack.c.bf16 %v227_v8, %v224_v7  ;;  %v774_v7 = vld [vmem:[#allocation2 + $0x78] sm:$0xff]  ;;  %p3600_p0 = pnand %p3599_p13, %p3593_p10 }
  0x43   :  { %3270 = vmatprep.subr.bf16.mxu1 %v3269_v54 }
  0x44   :  { %3252 = vmatpush3.bf16.msra.mxu0 %v3249_v12 }
  0x45   :  { %3254 = vmatprep.subr.bf16.mxu0 %v3253_v15 }
  0x46   :  { %3272 = vmatpush1.bf16.msra.mxu1 %v3271_v57 }
  0x47   :  { %3274 = vmatprep.subr.bf16.mxu1 %v3273_v60 }
  0x48   :  { %3256 = vmatpush3.bf16.msra.mxu0 %v3253_v15 }
  0x49   :  { %3258 = vmatprep.subr.bf16.mxu0 %v3257_v18 }
  0x4c   :  { %3260 = vmatpush3.bf16.msra.mxu0 %v3257_v18 }
  0x4d   :  { %3262 = vmatprep.subr.bf16.mxu0 %v3261_v21 }
  0x50   :  { %3264 = vmatpush3.bf16.msra.mxu0 %v3261_v21 }
  0x51   :  { %3080 = vmatprep.subr.mxu0 %v90_v22 }
  0x54   :  { %3081 = vmatpush3.msra.mxu0 %v90_v22 }
  0xb8   :  { %v68_v25 = vpop.permute.xlu0 %67 }
  0xb9   :  { %vm72_vm1 = vcmp.eq.s32.totalorder %v65_v24, %v68_v25 }
  0xba   :  { %v2895_v26 = vsel %vm72_vm1, 1.0, %v3628_v9 }
  0xbb   :  { %3082 = vmatprep.mubr.msk.f32.mxu0 %vm92_vm0, %v2895_v26 }
  0xbc   :  { %v71_v27 = vpop.permute.xlu0 %70 }
  0xbd   :  { %vm73_vm2 = vcmp.eq.s32.totalorder %v65_v24, %v71_v27  ;;  %v2907_v27 = vld [vmem:[#allocation7 + $0x4] ss:$0 sm:$0xff] }
  0xbe   :  { %v2896_v28 = vsel %vm73_vm2, 1.0, %v3628_v9 }
  0xbf   :  { %3083 = vmatmul.mubr.msk.f32.vlgmr.msra.gmra.mrb[0].mxu0 %vm92_vm0, %v2896_v28 }
 0x192   :  { %v3084_v30 = vpop.f32.mrb[0].mxu0 }
 0x193   :  { %v165_v31 = vpop.f32.mrb[1].mxu0  ;;  %v171_v33 = vadd.f32 %v3084_v30, %v91_v29 }
 0x194   :  { %v166_v32 = vadd.f32 %v165_v31, %v91_v29 }
 0x195   :  { %v180_v35 = vsel %vm176_vm3, %v171_v33, 0.0 }
 0x196   :  { %v177_v34 = vsel %vm176_vm3, %v166_v32, 0.0 }
 0x197   :  { %178 = vadd.xlane.f32.xlu1 %v177_v34 }
 0x19b   :  { %181 = vadd.xlane.f32.xlu1 %v180_v35 }
 0x224   :  { %v179_v36 = vpop.xlane.xlu1 %178 }
 0x225   :  { %v184_v37 = vmul.f32 0.03125, %v179_v36  ;;  %v568_v36 = vshrl.u32 %v64_v23, 7 }
 0x227   :  { %v186_v38 = vsub.f32 %v166_v32, %v184_v37  ;;  %v561_v37 = vld [vmem:[%s4019_s1] sm:$0x3]  ;;  %s3632_s1 = smov 32  }
 0x228   :  { %v182_v39 = vpop.xlane.xlu1 %181 }
 0x229   :  { %v185_v40 = vmul.f32 0.03125, %v182_v39  ;;  %v188_v41 = vmul.f32 %v186_v38, %v186_v38  ;;  %v562_v39 = vsub.f32 1.0, %v561_v37 }
 0x22b   :  { %v187_v42 = vsub.f32 %v171_v33, %v185_v40  ;;  %v190_v43 = vsel %vm176_vm3, %v188_v41, 0.0  ;;  %v3630_v33 = vmov 1966171168  }
 0x22c   :  { %191 = vadd.xlane.f32.xlu0 %v190_v43  ;;  %v565_v34 = vunpack.c.l.s4 %v3630_v33 }
 0x22d   :  { %v189_v44 = vmul.f32 %v187_v42, %v187_v42 }
 0x22e   :  { %v566_v35 = vunpack.c.0.s8 %v565_v34 }
 0x22f   :  { %v193_v45 = vsel %vm176_vm3, %v189_v44, 0.0  ;;  %v594_v44 = vsub.s32 0, %v568_v36 }
 0x230   :  { %194 = vadd.xlane.f32.xlu1 %v193_v45 }
 0x2b9   :  { %v192_v61 = vpop.xlane.xlu0 %191 }
 0x2ba   :  { %v196_v62 = vmul.f32 0.03125, %v192_v61 }
 0x2bc   :  { %v198_v63 = vadd.f32 1e-12, %v196_v62 }
 0x2bd   :  { %v195_v0 = vpop.xlane.xlu1 %194 }
 0x2be   :  { %3394 = vrsqrt.f32 %v198_v63  ;;  %v197_v1 = vmul.f32 0.03125, %v195_v0 }
 0x2c0   :  { %v199_v2 = vadd.f32 1e-12, %v197_v1 }
 0x2c2   :  { %3396 = vrsqrt.f32 %v199_v2 }
 0x2c8   :  { %v3395_v3 = vpop.eup %3394 }
 0x2c9   :  { %v202_v5 = vmul.f32 %v3395_v3, %v186_v38  ;;  %v569_v38 = vsub.s32 %v566_v35, %v568_v36 }
 0x2cb   :  { %v208_v10 = vmul.f32 %v2899_v4, %v202_v5  ;;  %v570_v40 = vrot.slane %v562_v39, %v569_v38 }
 0x2cc   :  { %v3397_v11 = vpop.eup %3396 }
 0x2cd   :  { %v3722_v12 = vadd.f32 %v2900_v6, %v208_v10  ;;  %v203_v13 = vmul.f32 %v3397_v11, %v187_v42  ;;  %v578_v41 = vrot.slane %v570_v40, %v569_v38  ;;  %v571_v42 = vcombine.high %v570_v40, %v570_v40 }
 0x2cf   :  { %2901 = vmatmul.mubr.msk.f32.vlgmr.msra.gmra.mrb[0].mxu1 %vm176_vm3, %v3722_v12  ;;  %v209_v15 = vmul.f32 %v2899_v4, %v203_v13  ;;  %v588_v43 = vmul.f32 -1e+09, %v578_v41  ;;  %v585_v45 = vrot.slane %v571_v42, %v569_v38  ;;  %v905_v42 = vld [vmem:[#allocation2 + $0x20] sm:$0xff] }
 0x2d0   :  { %3276 = vmatpush3.bf16.msra.mxu1 %v3273_v60  ;;  %304 = vmatprep.mubr.f32.mxu1 %v3628_v9 }
 0x2d1   :  { %v3727_v16 = vadd.f32 %v2900_v6, %v209_v15  ;;  %3278 = vmatprep.subr.bf16.mxu1 %v3277_v14  ;;  %v595_v46 = vrot.slane %v588_v43, %v594_v44  ;;  %v589_v47 = vmul.f32 -1e+09, %v585_v45  ;;  %v773_v6 = vld [vmem:[#allocation2 + $0x18] sm:$0xff]  ;;  %v908_v45 = vld [vmem:[#allocation2 + $0x140] sm:$0xff] }
 0x2d2   :  { %v3281_v11 = vpack.c.bf16 %v774_v7, %v773_v6  ;;  %v775_v15 = vld [vmem:[#allocation2 + $0xd8] sm:$0xff]  ;;  %v1019_v7 = vld [vmem:[#allocation5 + $0x30] sm:$0xff] }
 0x2d3   :  { %2902 = vmatmul.mubr.msk.f32.gmra.mrb[2].mxu1 %vm176_vm3, %v3727_v16  ;;  %v599_v23 = vrot.slane %v589_v47, %v594_v44  ;;  %v907_v44 = vld [vmem:[#allocation2 + $0xe0] sm:$0xff] }
 0x2d4   :  { %3280 = vmatpush3.bf16.msra.mxu1 %v3277_v14  ;;  %3093 = vmatprep.mubr.msk.f32.mxu1 %vm176_vm3, %v3722_v12 }
 0x2d5   :  { %3096 = vmatprep.subr.mxu1 %v3628_v9 }
 0x2d7   :  { %3094 = vmatmul.mubr.msk.f32.vlgmr.msra.gmra.mrb[4].mxu1 %vm176_vm3, %v3727_v16 }
 0x2d8   :  { %3098 = vmatprep.mubr.msk.f32.mxu1 %vm3629_vm4, %v3628_v9 }
 0x3a2   :  { %v300_v18 = vpop.f32.mrb[0].mxu1 }
 0x3a3   :  { %v302_v19 = vpop.f32.mrb[1].mxu1  ;;  %v391_v24 = vadd.f32 %v2905_v20, %v300_v18 }
 0x3a4   :  { %v398_v21 = vadd.f32 %v2906_v17, %v302_v19 }
 0x3a6   :  { %v306_v22 = vpop.f32.mrb[2].mxu1  ;;  %3097 = vmatpush3.xpose.msk.msra.mxu1 %vm176_vm3, %v398_v21 }
 0x3a7   :  { %v308_v25 = vpop.f32.mrb[3].mxu1  ;;  %3101 = vmatprep.subr.mxu1 %v3628_v9  ;;  %v392_v29 = vadd.f32 %v2905_v20, %v306_v22 }
 0x3a8   :  { %v399_v26 = vadd.f32 %v2906_v17, %v308_v25  ;;  %v776_v17 = vld [vmem:[#allocation2 + $0x138] sm:$0xff] }
 0x3a9   :  { %3099 = vmatmul.mubr.msk.f32.vlgmr.msra.gmra.mrb[6].mxu1 %vm176_vm3, %v391_v24  ;;  %v3285_v18 = vpack.c.bf16 %v776_v17, %v775_v15  ;;  %v2914_v24 = vld [vmem:[#allocation7 + $0x5] ss:$0 sm:$0xff] }
 0x3aa   :  { %v3095_v28 = vpop.f32.mrb[4].mxu1  ;;  %3102 = vmatpush3.xpose.msk.msra.mxu1 %vm176_vm3, %v399_v26  ;;  %3103 = vmatprep.mubr.msk.f32.mxu1 %vm3629_vm4, %v3628_v9 }
 0x3ab   :  { %v406_v30 = vadd.f32 %v3095_v28, %v2907_v27  ;;  %v377_v31 = vpop.f32.mrb[5].mxu1  ;;  %3106 = vmatprep.subr.mxu1 %v3628_v9 }
 0x3ac   :  { %v405_v32 = vadd.f32 %v2907_v27, %v377_v31 }
 0x3ad   :  { %3104 = vmatmul.mubr.msk.f32.vlgmr.msra.gmra.mrb[8].mxu1 %vm176_vm3, %v392_v29 }
 0x3ae   :  { %3107 = vmatpush3.msra.mxu1 %v405_v32  ;;  %3108 = vmatprep.mubr.msk.f32.mxu1 %vm3629_vm4, %v3628_v9 }
 0x3af   :  { %3111 = vmatprep.subr.mxu1 %v3628_v9 }
 0x47c   :  { %v479_v48 = vpop.f32.mrb[6].mxu1 }
 0x47d   :  { %v559_v49 = vmul.f32 0.17677669, %v479_v48  ;;  %v3100_v50 = vpop.f32.mrb[7].mxu1 }
 0x47f   :  { %v602_v51 = vadd.f32 %v595_v46, %v559_v49  ;;  %v3293_v46 = vpack.c.bf16 %v908_v45, %v907_v44 }
 0x480   :  { %v555_v52 = vpop.f32.mrb[8].mxu1 }
 0x481   :  { %v560_v53 = vmul.f32 0.17677669, %v555_v52  ;;  %v3105_v54 = vpop.f32.mrb[9].mxu1  ;;  %v605_v55 = vsel %vm604_vm5, %v602_v51, -inf }
 0x482   :  { %606 = vmax.xlane.f32.xlu1 %v605_v55  ;;  %v2918_v55 = vld [vmem:[#allocation7 + $0x7] ss:$0 sm:$0xff] }
 0x483   :  { %v603_v56 = vadd.f32 %v599_v23, %v560_v53  ;;  %v2917_v53 = vld [vmem:[#allocation7 + $0x6] ss:$0 sm:$0xff] }
 0x485   :  { %v608_v57 = vsel %vm604_vm5, %v603_v56, -inf }
 0x486   :  { %609 = vmax.xlane.f32.xlu1 %v608_v57 }
 0x50f   :  { %v607_v58 = vpop.xlane.xlu1 %606 }
 0x510   :  { %v611_v59 = vsub.f32 %v602_v51, %v607_v58 }
 0x512   :  { %v613_v60 = vmul.f32 1.442695, %v611_v59 }
 0x513   :  { %v610_v61 = vpop.xlane.xlu1 %609 }
 0x514   :  { %3398 = vpow2.f32 %v613_v60  ;;  %v612_v62 = vsub.f32 %v603_v56, %v610_v61 }
 0x516   :  { %v615_v63 = vmul.f32 1.442695, %v612_v62  ;;  %v1013_v62 = vld [vmem:[#allocation5] sm:$0xff] }
 0x518   :  { %3400 = vpow2.f32 %v615_v63  ;;  %v1014_v63 = vld [vmem:[#allocation5 + $0x8] sm:$0xff] }
 0x51e   :  { %v3399_v0 = vpop.eup %3398 }
 0x51f   :  { %v617_v1 = vsel %vm604_vm5, %v3399_v0, 0.0 }
 0x520   :  { %618 = vadd.xlane.f32.xlu1 %v617_v1  ;;  %v1015_v1 = vld [vmem:[#allocation5 + $0x10] sm:$0xff] }
 0x522   :  { %v3401_v2 = vpop.eup %3400 }
 0x523   :  { %v620_v3 = vsel %vm604_vm5, %v3401_v2, 0.0 }
 0x524   :  { %621 = vadd.xlane.f32.xlu1 %v620_v3 }
 0x5ad   :  { %v619_v4 = vpop.xlane.xlu1 %618 }
 0x5ae   :  { %3402 = vrcp.f32 %v619_v4  ;;  %v1017_v4 = vld [vmem:[#allocation5 + $0x20] sm:$0xff] }
 0x5b1   :  { %v622_v5 = vpop.xlane.xlu1 %621 }
 0x5b2   :  { %3404 = vrcp.f32 %v622_v5  ;;  %v1018_v5 = vld [vmem:[#allocation5 + $0x28] sm:$0xff] }
 0x5b3   :  { %v3305_v6 = vpack.c.bf16 %v1018_v5, %v1017_v4  ;;  %v1176_v5 = vld [vmem:[#allocation2 + $0x170] sm:$0xff] }
 0x5b8   :  { %v3403_v8 = vpop.eup %3402 }
 0x5b9   :  { %v625_v10 = vmul.f32 %v3403_v8, %v3399_v0  ;;  %v3297_v0 = vpack.c.bf16 %v1014_v63, %v1013_v62  ;;  %v1020_v8 = vld [vmem:[#allocation5 + $0x38] sm:$0xff]  ;;  %v1154_v62 = vld [vmem:[#allocation2 + $0x48] sm:$0xff] }
 0x5ba   :  { %v1161_v63 = vld [vmem:[#allocation2 + $0xa8] sm:$0xff] }
 0x5bb   :  { %3109 = vmatmul.mubr.msk.f32.vlgmr.msra.gmra.mrb[10].mxu1 %vm604_vm5, %v625_v10  ;;  %v3309_v10 = vpack.c.bf16 %v1020_v8, %v1019_v7  ;;  %v1171_v7 = vld [vmem:[#allocation2 + $0x148] sm:$0xff] }
 0x5bc   :  { %v3405_v13 = vpop.eup %3404  ;;  %3112 = vmatpush3.msra.mxu1 %v406_v30  ;;  %3113 = vmatprep.mubr.msk.f32.mxu1 %vm3629_vm4, %v3628_v9 }
 0x5bd   :  { %v626_v14 = vmul.f32 %v3405_v13, %v3401_v2  ;;  %3282 = vmatprep.subr.bf16.mxu1 %v3281_v11  ;;  %v1016_v2 = vld [vmem:[#allocation5 + $0x18] sm:$0xff] }
 0x5be   :  { %v3301_v3 = vpack.c.bf16 %v1016_v2, %v1015_v1  ;;  %v1165_v1 = vld [vmem:[#allocation2 + $0xf0] sm:$0xff] }
 0x5bf   :  { %3114 = vmatmul.mubr.msk.f32.vlgmr.msra.gmra.mrb[12].mxu1 %vm604_vm5, %v626_v14  ;;  %v1172_v2 = vld [vmem:[#allocation2 + $0x150] sm:$0xff] }
 0x5c0   :  { %3284 = vmatpush3.bf16.msra.mxu1 %v3281_v11  ;;  %v2919_v11 = vld [vmem:[#allocation7 + $0x8] ss:$0 sm:$0xff]  ;;  %v3317_v4 = vpack.c.bf16 %v1172_v2, %v1165_v1  ;;  %v2964_v2 = vld [vmem:[#allocation7 + $0x10] ss:$0 sm:$0xff] }
 0x5c1   :  { %3286 = vmatprep.subr.bf16.mxu1 %v3285_v18 }
 0x5c4   :  { %3288 = vmatpush3.bf16.msra.mxu1 %v3285_v18 }
 0x5c5   :  { %3298 = vmatprep.subr.bf16.mxu1 %v3297_v0 }
 0x68e   :  { %v696_v19 = vpop.f32.mrb[10].mxu1 }
 0x68f   :  { %v3110_v20 = vpop.f32.mrb[11].mxu1  ;;  %3124 = vmatprep.mubr.msk.f32.mxu1 %vm176_vm3, %v696_v19 }
 0x692   :  { %v769_v21 = vpop.f32.mrb[12].mxu1 }
 0x693   :  { %v3115_v22 = vpop.f32.mrb[13].mxu1  ;;  %3125 = vmatmul.mubr.msk.f32.vlgmr.msra.gmra.mrb[14].mxu1 %vm176_vm3, %v769_v21 }
 0x694   :  { %3300 = vmatpush3.bf16.msra.mxu1 %v3297_v0  ;;  %v3331_v0 = vpack.c.bf16 %v1161_v63, %v1154_v62 }
 0x695   :  { %3302 = vmatprep.subr.bf16.mxu1 %v3301_v3 }
 0x698   :  { %3304 = vmatpush3.bf16.msra.mxu1 %v3301_v3  ;;  %v1169_v3 = vld [vmem:[#allocation2 + $0x110] sm:$0xff] }
 0x699   :  { %3306 = vmatprep.subr.bf16.mxu1 %v3305_v6  ;;  %v3333_v8 = vpack.c.bf16 %v1176_v5, %v1169_v3 }
 0x69c   :  { %3308 = vmatpush3.bf16.msra.mxu1 %v3305_v6  ;;  %v1164_v6 = vld [vmem:[#allocation2 + $0xe8] sm:$0xff] }
 0x69d   :  { %3310 = vmatprep.subr.bf16.mxu1 %v3309_v10 }
 0x6a0   :  { %3312 = vmatpush3.bf16.msra.mxu1 %v3309_v10  ;;  %v3319_v10 = vpack.c.bf16 %v1171_v7, %v1164_v6 }
 0x766   :  { %v3126_v25 = vpop.f32.mrb[14].mxu1 }
 0x767   :  { %v854_v26 = vpop.f32.mrb[15].mxu1  ;;  %v860_v27 = vadd.f32 %v3126_v25, %v2914_v24 }
 0x768   :  { %v855_v28 = vadd.f32 %v2914_v24, %v854_v26 }
 0x769   :  { %v864_v31 = vadd.f32 %v860_v27, %v3727_v16  ;;  %v906_v16 = vld [vmem:[#allocation2 + $0x80] sm:$0xff] }
 0x76a   :  { %v863_v29 = vadd.f32 %v855_v28, %v3722_v12  ;;  %v3289_v43 = vpack.c.bf16 %v906_v16, %v905_v42 }
 0x76b   :  { %v870_v32 = vsel %vm176_vm3, %v864_v31, 0.0 }
 0x76c   :  { %v867_v30 = vsel %vm176_vm3, %v863_v29, 0.0  ;;  %3290 = vmatprep.subr.bf16.mxu0 %v3289_v43 }
 0x76d   :  { %868 = vadd.xlane.f32.xlu1 %v867_v30  ;;  %3292 = vmatpush3.bf16.msra.mxu0 %v3289_v43 }
 0x76e   :  { %3294 = vmatprep.subr.bf16.mxu0 %v3293_v46 }
 0x771   :  { %871 = vadd.xlane.f32.xlu1 %v870_v32  ;;  %3296 = vmatpush3.bf16.msra.mxu0 %v3293_v46 }
 0x7fa   :  { %v869_v33 = vpop.xlane.xlu1 %868 }
 0x7fb   :  { %v873_v34 = vmul.f32 0.03125, %v869_v33 }
 0x7fd   :  { %v875_v35 = vsub.f32 %v863_v29, %v873_v34 }
 0x7fe   :  { %v872_v36 = vpop.xlane.xlu1 %871 }
 0x7ff   :  { %v874_v37 = vmul.f32 0.03125, %v872_v36  ;;  %v877_v38 = vmul.f32 %v875_v35, %v875_v35 }
 0x801   :  { %v876_v39 = vsub.f32 %v864_v31, %v874_v37  ;;  %v879_v40 = vsel %vm176_vm3, %v877_v38, 0.0  ;;  %v2922_v37 = vld [vmem:[#allocation7 + $0x9] ss:$0 sm:$0xff] }
 0x802   :  { %880 = vadd.xlane.f32.xlu1 %v879_v40 }
 0x803   :  { %v878_v41 = vmul.f32 %v876_v39, %v876_v39 }
 0x805   :  { %v882_v12 = vsel %vm176_vm3, %v878_v41, 0.0 }
 0x806   :  { %883 = vadd.xlane.f32.xlu0 %v882_v12 }
 0x88f   :  { %v881_v47 = vpop.xlane.xlu1 %880 }
 0x890   :  { %v885_v48 = vmul.f32 0.03125, %v881_v47 }
 0x892   :  { %v887_v49 = vadd.f32 1e-12, %v885_v48 }
 0x893   :  { %v884_v50 = vpop.xlane.xlu0 %883 }
 0x894   :  { %3406 = vrsqrt.f32 %v887_v49  ;;  %v886_v51 = vmul.f32 0.03125, %v884_v50 }
 0x896   :  { %v888_v23 = vadd.f32 1e-12, %v886_v51 }
 0x898   :  { %3408 = vrsqrt.f32 %v888_v23 }
 0x89e   :  { %v3407_v52 = vpop.eup %3406 }
 0x89f   :  { %v891_v54 = vmul.f32 %v3407_v52, %v875_v35 }
 0x8a1   :  { %v897_v56 = vmul.f32 %v2917_v53, %v891_v54  ;;  %v1158_v54 = vld [vmem:[#allocation2 + $0x90] sm:$0xff] }
 0x8a2   :  { %v3409_v57 = vpop.eup %3408 }
 0x8a3   :  { %v892_v58 = vmul.f32 %v3409_v57, %v876_v39  ;;  %v903_v59 = vadd.f32 %v2918_v55, %v897_v56  ;;  %v1162_v57 = vld [vmem:[#allocation2 + $0xb0] sm:$0xff] }
 0x8a5   :  { %v898_v60 = vmul.f32 %v2917_v53, %v892_v58  ;;  %3135 = vmatprep.mubr.msk.f32.mxu0 %vm176_vm3, %v903_v59  ;;  %v1151_v53 = vld [vmem:[#allocation2 + $0x30] sm:$0xff]  ;;  %v1150_v58 = vld [vmem:[#allocation2 + $0x28] sm:$0xff] }
 0x8a6   :  { %v3313_v56 = vpack.c.bf16 %v1158_v54, %v1151_v53 }
 0x8a7   :  { %v904_v61 = vadd.f32 %v2918_v55, %v898_v60  ;;  %v1155_v55 = vld [vmem:[#allocation2 + $0x50] sm:$0xff] }
 0x8a8   :  { %v3329_v60 = vpack.c.bf16 %v1162_v57, %v1155_v55  ;;  %3314 = vmatprep.subr.bf16.mxu0 %v3313_v56 }
 0x8a9   :  { %3136 = vmatmul.mubr.msk.f32.vlgmr.msra.gmra.mrb[2].mxu0 %vm176_vm3, %v904_v61 }
 0x8aa   :  { %1248 = vmatprep.mubr.f32.mxu0 %v3628_v9  ;;  %3330 = vmatprep.subr.bf16.mxu1 %v3329_v60 }
 0x97c   :  { %v3137_v13 = vpop.f32.mrb[2].mxu0 }
 0x97d   :  { %v992_v14 = vadd.f32 %v3137_v13, %v2919_v11  ;;  %v986_v15 = vpop.f32.mrb[3].mxu0  ;;  %v1175_v13 = vld [vmem:[#allocation2 + $0x168] sm:$0xff] }
 0x97e   :  { %v987_v17 = vadd.f32 %v2919_v11, %v986_v15  ;;  %v1168_v11 = vld [vmem:[#allocation2 + $0x108] sm:$0xff]  ;;  %v1153_v15 = vld [vmem:[#allocation2 + $0x40] sm:$0xff] }
 0x97f   :  { %v996_v18 = vmul.f32 %v992_v14, %v992_v14 }
 0x980   :  { %v995_v19 = vmul.f32 %v987_v17, %v987_v17 }
 0x981   :  { %v998_v20 = vmul.f32 %v996_v18, %v992_v14 }
 0x982   :  { %v997_v21 = vmul.f32 %v995_v19, %v987_v17  ;;  %v3631_v19 = vmov 0.0|0.0  }
 0x983   :  { %v1000_v22 = vmul.f32 0.044715, %v998_v20 }
 0x984   :  { %v999_v24 = vmul.f32 0.044715, %v997_v21 }
 0x985   :  { %v1002_v25 = vadd.f32 %v1000_v22, %v992_v14 }
 0x986   :  { %v1001_v26 = vadd.f32 %v999_v24, %v987_v17 }
 0x987   :  { %v1004_v27 = vmul.f32 0.7978846, %v1002_v25 }
 0x988   :  { %v1003_v28 = vmul.f32 0.7978846, %v1001_v26 }
 0x989   :  { %3410 = vtanh.f32 %v1004_v27 }
 0x98a   :  { %3412 = vtanh.f32 %v1003_v28 }
 0x993   :  { %v3411_v29 = vpop.eup %3410 }
 0x994   :  { %v3413_v30 = vpop.eup %3412  ;;  %v1008_v31 = vadd.f32 1.0, %v3411_v29  ;;  %v2925_v29 = vld [vmem:[#allocation7 + $0xa] ss:$0 sm:$0xff] }
 0x995   :  { %v1007_v32 = vadd.f32 1.0, %v3413_v30 }
 0x996   :  { %v1010_v33 = vmul.f32 0.5, %v1008_v31  ;;  %v1152_v31 = vld [vmem:[#allocation2 + $0x38] sm:$0xff] }
 0x997   :  { %v1009_v34 = vmul.f32 0.5, %v1007_v32  ;;  %v1159_v32 = vld [vmem:[#allocation2 + $0x98] sm:$0xff] }
 0x998   :  { %v1012_v36 = vmul.f32 %v1010_v33, %v992_v14  ;;  %v3335_v14 = vpack.c.bf16 %v1175_v13, %v1168_v11 }
 0x999   :  { %v1011_v35 = vmul.f32 %v1009_v34, %v987_v17  ;;  %v1160_v17 = vld [vmem:[#allocation2 + $0xa0] sm:$0xff] }
 0x99a   :  { %v3321_v18 = vpack.c.bf16 %v1160_v17, %v1153_v15  ;;  %v2926_v34 = vld [vmem:[#allocation7 + $0xb] ss:$0 sm:$0xff] }
 0x99b   :  { %3154 = vmatprep.mubr.msk.f32.mxu1 %vm1026_vm6, %v1011_v35  ;;  %v1167_v35 = vld [vmem:[#allocation2 + $0x100] sm:$0xff] }
 0x99c   :  { %3155 = vmatmul.mubr.msk.f32.vlgmr.msra.gmra.mrb[16].mxu1 %vm1026_vm6, %v1012_v36  ;;  %v1174_v36 = vld [vmem:[#allocation2 + $0x160] sm:$0xff] }
 0x99d   :  { %1402 = vmatprep.mubr.f32.mxu1 %v3628_v9  ;;  %3332 = vmatpush1.bf16.msra.mxu1 %v3331_v0 }
 0x99e   :  { %3334 = vmatprep.subr.bf16.mxu1 %v3333_v8 }
 0x9a1   :  { %3336 = vmatpush1.bf16.msra.mxu1 %v3335_v14 }
 0x9a2   :  { %3348 = vmatprep.subr.bf16.mxu1 %v3631_v19 }
 0xa6f   :  { %v3156_v38 = vpop.f32.mrb[16].mxu1 }
 0xa70   :  { %v1105_v39 = vadd.f32 %v3156_v38, %v2922_v37  ;;  %v1099_v40 = vpop.f32.mrb[17].mxu1  ;;  %v3323_v38 = vpack.c.bf16 %v1159_v32, %v1152_v31 }
 0xa71   :  { %v1100_v41 = vadd.f32 %v2922_v37, %v1099_v40 }
 0xa72   :  { %v1109_v12 = vadd.f32 %v1105_v39, %v904_v61  ;;  %v1166_v39 = vld [vmem:[#allocation2 + $0xf8] sm:$0xff] }
 0xa73   :  { %v1108_v42 = vadd.f32 %v1100_v41, %v903_v59  ;;  %v1157_v59 = vld [vmem:[#allocation2 + $0x88] sm:$0xff] }
 0xa74   :  { %v1115_v16 = vsel %vm176_vm3, %v1109_v12, 0.0  ;;  %v3315_v61 = vpack.c.bf16 %v1157_v59, %v1150_v58 }
 0xa75   :  { %1116 = vadd.xlane.f32.xlu0 %v1115_v16  ;;  %v1112_v43 = vsel %vm176_vm3, %v1108_v42, 0.0  ;;  %v1497_v16 = vld [vmem:[#allocation5 + $0x40] sm:$0xff] }
 0xa76   :  { %1113 = vadd.xlane.f32.xlu1 %v1112_v43  ;;  %3316 = vmatpush1.bf16.msra.mxu0 %v3315_v61  ;;  %v1498_v43 = vld [vmem:[#allocation5 + $0x48] sm:$0xff] }
 0xa77   :  { %3318 = vmatprep.subr.bf16.mxu0 %v3317_v4 }
 0xa7a   :  { %3320 = vmatpush1.bf16.msra.mxu0 %v3319_v10 }
 0xa7b   :  { %3322 = vmatprep.subr.bf16.mxu0 %v3321_v18 }
 0xb02   :  { %v1117_v44 = vpop.xlane.xlu0 %1116 }
 0xb03   :  { %v1119_v45 = vmul.f32 0.03125, %v1117_v44  ;;  %v1114_v46 = vpop.xlane.xlu1 %1113  ;;  %v1156_v44 = vld [vmem:[#allocation2 + $0x58] sm:$0xff] }
 0xb04   :  { %v1118_v47 = vmul.f32 0.03125, %v1114_v46 }
 0xb05   :  { %v1121_v48 = vsub.f32 %v1109_v12, %v1119_v45  ;;  %v3325_v12 = vpack.c.bf16 %v1174_v36, %v1167_v35  ;;  %v1163_v45 = vld [vmem:[#allocation2 + $0xb8] sm:$0xff] }
 0xb06   :  { %v1120_v49 = vsub.f32 %v1108_v42, %v1118_v47  ;;  %v1173_v42 = vld [vmem:[#allocation2 + $0x158] sm:$0xff]  ;;  %v3781_v47 = vpack.c.bf16 %v1498_v43, %v1497_v16 }
 0xb07   :  { %v1123_v50 = vmul.f32 %v1121_v48, %v1121_v48  ;;  %v3327_v46 = vpack.c.bf16 %v1173_v42, %v1166_v39 }
 0xb08   :  { %v1122_v51 = vmul.f32 %v1120_v49, %v1120_v49 }
 0xb09   :  { %v1127_v23 = vsel %vm176_vm3, %v1123_v50, 0.0  ;;  %v1170_v50 = vld [vmem:[#allocation2 + $0x118] sm:$0xff] }
 0xb0a   :  { %1128 = vadd.xlane.f32.xlu0 %v1127_v23  ;;  %v1124_v52 = vsel %vm176_vm3, %v1122_v51, 0.0  ;;  %v1177_v51 = vld [vmem:[#allocation2 + $0x178] sm:$0xff] }
 0xb0b   :  { %1125 = vadd.xlane.f32.xlu1 %v1124_v52  ;;  %v3341_v23 = vpack.c.bf16 %v1177_v51, %v1170_v50 }
 0xb97   :  { %v1129_v20 = vpop.xlane.xlu0 %1128 }
 0xb98   :  { %v1131_v21 = vmul.f32 0.03125, %v1129_v20  ;;  %v1126_v22 = vpop.xlane.xlu1 %1125 }
 0xb99   :  { %v1130_v24 = vmul.f32 0.03125, %v1126_v22  ;;  %v3814_v22 = vld [vmem:[#allocation7 + $0xd] ss:$0 sm:$0xff] }
 0xb9a   :  { %v1133_v25 = vadd.f32 1e-12, %v1131_v21 }
 0xb9b   :  { %v1132_v26 = vadd.f32 1e-12, %v1130_v24 }
 0xb9c   :  { %3414 = vrsqrt.f32 %v1133_v25 }
 0xb9d   :  { %3416 = vrsqrt.f32 %v1132_v26 }
 0xba6   :  { %v3415_v27 = vpop.eup %3414 }
 0xba7   :  { %v3417_v28 = vpop.eup %3416  ;;  %v1137_v33 = vmul.f32 %v3415_v27, %v1121_v48 }
 0xba8   :  { %v1136_v30 = vmul.f32 %v3417_v28, %v1120_v49  ;;  %v3337_v49 = vpack.c.bf16 %v1163_v45, %v1156_v44 }
 0xba9   :  { %v1143_v41 = vmul.f32 %v2925_v29, %v1137_v33 }
 0xbaa   :  { %v1142_v37 = vmul.f32 %v2925_v29, %v1136_v30 }
 0xbab   :  { %v1149_v48 = vadd.f32 %v2926_v34, %v1143_v41 }
 0xbac   :  { %v1148_v40 = vadd.f32 %v2926_v34, %v1142_v37 }
 0xbae   :  { %2927 = vmatmul.mubr.msk.f32.vlgmr.msra.gmra.mrb[4].mxu0 %vm176_vm3, %v1148_v40  ;;  %2931 = vmatmul.mubr.msk.f32.vlgmr.msra.gmra.mrb[18].mxu1 %vm176_vm3, %v1148_v40 }
 0xbaf   :  { %3324 = vmatpush1.bf16.msra.mxu0 %v3323_v38  ;;  %1254 = vmatprep.mubr.f32.mxu0 %v3628_v9 }
 0xbb0   :  { %1408 = vmatprep.mubr.f32.mxu1 %v3628_v9  ;;  %3326 = vmatprep.subr.bf16.mxu0 %v3325_v12 }
 0xbb1   :  { %3350 = vmatpush3.bf16.msra.mxu1 %v3781_v47 }
 0xbb2   :  { %2928 = vmatmul.mubr.msk.f32.gmra.mrb[6].mxu0 %vm176_vm3, %v1149_v48  ;;  %2932 = vmatmul.mubr.msk.f32.gmra.mrb[20].mxu1 %vm176_vm3, %v1149_v48 }
 0xbb3   :  { %3328 = vmatpush1.bf16.msra.mxu0 %v3327_v46  ;;  %1325 = vmatprep.mubr.f32.mxu0 %v3628_v9 }
 0xbb4   :  { %3338 = vmatprep.subr.bf16.mxu0 %v3337_v49  ;;  %3179 = vmatprep.mubr.msk.f32.mxu1 %vm3629_vm4, %v3628_v9 }
 0xbb5   :  { %3354 = vmatprep.subr.bf16.mxu1 %v3631_v19 }
 0xbb6   :  { %2929 = vmatmul.mubr.msk.f32.vlgmr.msra.gmra.mrb[8].mxu0 %vm176_vm3, %v1148_v40 }
 0xbb7   :  { %3340 = vmatpush3.bf16.msra.mxu0 %v3337_v49  ;;  %1331 = vmatprep.mubr.f32.mxu0 %v3628_v9 }
 0xbb8   :  { %3342 = vmatprep.subr.bf16.mxu0 %v3341_v23 }
 0xbba   :  { %2930 = vmatmul.mubr.msk.f32.gmra.mrb[10].mxu0 %vm176_vm3, %v1149_v48 }
 0xbbb   :  { %3344 = vmatpush3.bf16.msra.mxu0 %v3341_v23  ;;  %3165 = vmatprep.mubr.msk.f32.mxu0 %vm176_vm3, %v1148_v40 }
 0xbbc   :  { %3345 = vmatprep.subr.bf16.mxu0 %v3631_v19 }
 0xbbe   :  { %3166 = vmatmul.mubr.msk.f32.vlgmr.msra.gmra.mrb[12].mxu0 %vm176_vm3, %v1149_v48 }
 0xbbf   :  { %3347 = vmatpush3.bf16.msra.mxu0 %v3781_v47  ;;  %3172 = vmatprep.mubr.msk.f32.mxu0 %vm3629_vm4, %v3628_v9 }
 0xbc0   :  { %3351 = vmatprep.subr.bf16.mxu0 %v3631_v19 }
 0xbc2   :  { %3173 = vmatmul.mubr.f32.vlgmr.msra.gmra.mrb[14].mxu0 %v3628_v9 }
 0xbc3   :  { %3353 = vmatpush3.bf16.msra.mxu0 %v3781_v47  ;;  %3186 = vmatprep.mubr.msk.f32.mxu0 %vm3629_vm4, %v3628_v9 }
 0xbc4   :  { %3357 = vmatprep.subr.bf16.mxu0 %v3631_v19 }
 0xc81   :  { %v3806_v52 = vpop.f32.mrb[4].mxu0  ;;  %v1404_v53 = vpop.f32.mrb[18].mxu1 }
 0xc82   :  { %v3808_v54 = vpop.f32.mrb[5].mxu0  ;;  %v1406_v55 = vpop.f32.mrb[19].mxu1  ;;  %v2666_v63 = vrot.slane %v1404_v53, 2 }
 0xc83   :  { %v2697_v4 = vrot.slane %v1406_v55, 3 }
 0xc85   :  { %v3810_v56 = vpop.f32.mrb[6].mxu0  ;;  %v1410_v57 = vpop.f32.mrb[20].mxu1 }
 0xc86   :  { %v3812_v58 = vpop.f32.mrb[7].mxu0  ;;  %v1412_v59 = vpop.f32.mrb[21].mxu1  ;;  %v2667_v7 = vrot.slane %v1410_v57, 2 }
 0xc87   :  { %v2698_v14 = vrot.slane %v1412_v59, 3 }
 0xc89   :  { %v1327_v60 = vpop.f32.mrb[8].mxu0 }
 0xc8a   :  { %v1329_v61 = vpop.f32.mrb[9].mxu0 }
 0xc8b   :  { %v2658_v62 = vrot.slane %v1329_v61, 1 }
 0xc8d   :  { %v2662_v0 = vadd.f32 %v2658_v62, %v1327_v60  ;;  %v1333_v1 = vpop.f32.mrb[10].mxu0 }
 0xc8e   :  { %v1335_v3 = vpop.f32.mrb[11].mxu0 }
 0xc8f   :  { %v2670_v5 = vadd.f32 %v2666_v63, %v2662_v0  ;;  %v2659_v6 = vrot.slane %v1335_v3, 1 }
 0xc91   :  { %v2676_v8 = vadd.f32 %v2964_v2, %v2670_v5  ;;  %v2663_v10 = vadd.f32 %v2659_v6, %v1333_v1  ;;  %v3167_v11 = vpop.f32.mrb[12].mxu0  ;;  %v2701_v13 = vadd.f32 %v2697_v4, %v2670_v5 }
 0xc92   :  { %v1481_v15 = vpop.f32.mrb[13].mxu0  ;;  %v2725_v24 = vrot.slane %v3167_v11, 4 }
 0xc93   :  { %v2678_v17 = vmax.f32 %v2676_v8, 0.0  ;;  %v2671_v18 = vadd.f32 %v2667_v7, %v2663_v10  ;;  %v2703_v20 = vadd.f32 %v2964_v2, %v2701_v13  ;;  %v2724_v21 = vrot.slane %v1481_v15, 4 }
 0xc95   :  { %v2681_v25 = vsel %vm2680_vm7, %v2678_v17, -inf  ;;  %v2677_v26 = vadd.f32 %v2964_v2, %v2671_v18  ;;  %v2702_v27 = vadd.f32 %v2698_v14, %v2671_v18  ;;  %v2705_v28 = vmax.f32 %v2703_v20, 0.0  ;;  %v1574_v29 = vpop.f32.mrb[14].mxu0 }
 0xc96   :  { %v2682_v30 = vrot.slane %v2681_v25, 4  ;;  %v2728_v31 = vadd.f32 %v2724_v21, %v2701_v13  ;;  %v3818_v32 = vadd.f32 %v3814_v22, %v1574_v29  ;;  %v3174_v33 = vpop.f32.mrb[15].mxu0 }
 0xc97   :  { %v2679_v34 = vmax.f32 %v2677_v26, 0.0  ;;  %v2704_v35 = vadd.f32 %v2964_v2, %v2702_v27  ;;  %v2729_v36 = vadd.f32 %v2725_v24, %v2702_v27  ;;  %v2708_v37 = vsel %vm2707_vm8, %v2705_v28, -inf  ;;  %v2935_v33 = vld [vmem:[#allocation7 + $0xc] ss:$0 sm:$0xff] }
 0xc98   :  { %v2683_v38 = vmax.f32 %v2681_v25, %v2682_v30  ;;  %v2709_v39 = vrot.slane %v2708_v37, 4  ;;  %v2730_v40 = vadd.f32 %v2964_v2, %v2728_v31  ;;  %1596 = vrot.lane.b32.xlu0 %v3818_v32, %s3625_s17  ;;  %v1579_v16 = vrot.slane %v3818_v32, 1 }
 0xc99   :  { %v2688_v41 = vsel %vm2680_vm7, %v2679_v34, -inf  ;;  %v2706_v12 = vmax.f32 %v2704_v35, 0.0  ;;  %v2731_v42 = vadd.f32 %v2964_v2, %v2729_v36  ;;  %v3837_v34 = vadd.f32 %v2935_v33, %v3810_v56 }
 0xc9a   :  { %v2684_v43 = vrot.slane %v2683_v38, 2  ;;  %v2689_v44 = vrot.slane %v2688_v41, 4  ;;  %v2710_v45 = vmax.f32 %v2708_v37, %v2709_v39  ;;  %v2732_v46 = vmax.f32 %v2730_v40, 0.0  ;;  %1598 = vrot.lane.b32.xlu1 %v1579_v16, %s3625_s17 }
 0xc9b   :  { %v2715_v48 = vsel %vm2707_vm8, %v2706_v12, -inf  ;;  %v2733_v49 = vmax.f32 %v2731_v42, 0.0  ;;  %v1583_v35 = vadd.f32 %v1579_v16, %v3837_v34  ;;  %v3841_v36 = vadd.f32 %v2935_v33, %v3806_v52 }
 0xc9c   :  { %v2685_v50 = vmax.f32 %v2683_v38, %v2684_v43  ;;  %v2690_v51 = vmax.f32 %v2688_v41, %v2689_v44  ;;  %v2716_v23 = vrot.slane %v2715_v48, 4  ;;  %v2711_v53 = vrot.slane %v2710_v45, 2 }
 0xc9d   :  { %v2742_v55 = vsel %vm2734_vm9, %v2733_v49, -inf  ;;  %v2735_v57 = vsel %vm2734_vm9, %v2732_v46, -inf  ;;  %v1582_v37 = vadd.f32 %v3818_v32, %v3841_v36  ;;  %v2938_v38 = vmul.f32 -1.442695, %v1583_v35 }
 0xc9e   :  { %v2691_v59 = vrot.slane %v2690_v51, 2  ;;  %v2717_v60 = vmax.f32 %v2715_v48, %v2716_v23  ;;  %v2743_v61 = vrot.slane %v2742_v55, 4  ;;  %v2712_v62 = vmax.f32 %v2710_v45, %v2711_v53 }
 0xc9f   :  { %v2736_v63 = vrot.slane %v2735_v57, 4  ;;  %v2686_v0 = vrot.slane %v2685_v50, 1  ;;  %v2937_v39 = vmul.f32 -1.442695, %v1582_v37  ;;  %3418 = vpow2.f32 %v2938_v38 }
 0xca0   :  { %v2692_v1 = vmax.f32 %v2690_v51, %v2691_v59  ;;  %v2718_v2 = vrot.slane %v2717_v60, 2  ;;  %v2744_v3 = vmax.f32 %v2742_v55, %v2743_v61  ;;  %v2713_v8 = vrot.slane %v2712_v62, 1 }
 0xca1   :  { %v2737_v4 = vmax.f32 %v2735_v57, %v2736_v63  ;;  %v2687_v14 = vmax.f32 %v2685_v50, %v2686_v0  ;;  %3420 = vpow2.f32 %v2937_v39 }
 0xca2   :  { %v2693_v5 = vrot.slane %v2692_v1, 1  ;;  %v2719_v6 = vmax.f32 %v2717_v60, %v2718_v2  ;;  %v2745_v7 = vrot.slane %v2744_v3, 2  ;;  %v2714_v20 = vmax.f32 %v2712_v62, %v2713_v8 }
 0xca3   :  { %v2738_v10 = vrot.slane %v2737_v4, 2 }
 0xca4   :  { %v2720_v11 = vrot.slane %v2719_v6, 1  ;;  %v2746_v13 = vmax.f32 %v2744_v3, %v2745_v7  ;;  %v2694_v15 = vmax.f32 %v2692_v1, %v2693_v5 }
 0xca5   :  { %v2739_v17 = vmax.f32 %v2737_v4, %v2738_v10 }
 0xca6   :  { %v2747_v18 = vrot.slane %v2746_v13, 1  ;;  %v2721_v21 = vmax.f32 %v2719_v6, %v2720_v11  ;;  %v2751_v24 = vsel %vm1635_vm10, %v2694_v15, %v2687_v14 }
 0xca7   :  { %v2740_v25 = vrot.slane %v2739_v17, 1 }
 0xca8   :  { %v2748_v26 = vmax.f32 %v2746_v13, %v2747_v18  ;;  %v2755_v27 = vsel %vm1635_vm10, %v2721_v21, %v2714_v20 }
 0xca9   :  { %v2741_v28 = vmax.f32 %v2739_v17, %v2740_v25  ;;  %v2761_v29 = vsel %vm604_vm5, %v2751_v24, %v2755_v27  ;;  %v3419_v40 = vpop.eup %3418 }
 0xcaa   :  { %v1591_v41 = vadd.f32 1.0, %v3419_v40 }
 0xcab   :  { %v2759_v30 = vsel %vm1635_vm10, %v2748_v26, %v2741_v28  ;;  %v3421_v12 = vpop.eup %3420 }
 0xcac   :  { %v3834_v31 = vsel %vm1504_vm11, %v2761_v29, %v2759_v30  ;;  %v1590_v42 = vadd.f32 1.0, %v3421_v12  ;;  %3422 = vrcp.f32 %v1591_v41 }
 0xcae   :  { %3424 = vrcp.f32 %v1590_v42 }
 0xcb6   :  { %v3423_v56 = vpop.eup %3422 }
 0xcb7   :  { %v1617_v23 = vsub.f32 1.0, %v3423_v56  ;;  %v1629_v55 = vmul.f32 0.0, %v3423_v56 }
 0xcb8   :  { %v3425_v52 = vpop.eup %3424 }
 0xcb9   :  { %v1616_v60 = vsub.f32 1.0, %v3425_v52  ;;  %v1628_v62 = vmul.f32 0.0, %v3425_v52 }
 0xd0a   :  { %v1597_v16 = vpop.permute.xlu0 %1596 }
 0xd0b   :  { %v1602_v45 = vmul.f32 %v3425_v52, %v1597_v16 }
 0xd0c   :  { %v1599_v43 = vpop.permute.xlu1 %1598 }
 0xd0d   :  { %v1603_v44 = vmul.f32 %v3423_v56, %v1599_v43 }
 0xd0f   :  { %1608 = vrot.lane.b32.xlu1 %v1603_v44, %s3632_s1 }
 0xd13   :  { %1606 = vrot.lane.b32.xlu1 %v1602_v45, %s3632_s1 }
 0xd81   :  { %v1609_v32 = vpop.permute.xlu1 %1608 }
 0xd82   :  { %v1613_v46 = vadd.f32 %v1609_v32, %v3837_v34 }
 0xd84   :  { %3426 = vtanh.f32 %v1613_v46 }
 0xd85   :  { %v1607_v48 = vpop.permute.xlu1 %1606 }
 0xd86   :  { %v1612_v49 = vadd.f32 %v1607_v48, %v3841_v36 }
 0xd88   :  { %3428 = vtanh.f32 %v1612_v49 }
 0xd8e   :  { %v3427_v50 = vpop.eup %3426 }
 0xd8f   :  { %1622 = vrot.lane.b32.xlu0 %v3427_v50, %s3633_s28 }
 0xd92   :  { %v3429_v51 = vpop.eup %3428 }
 0xd93   :  { %1620 = vrot.lane.b32.xlu1 %v3429_v51, %s3633_s28 }
 0xe01   :  { %v1623_v53 = vpop.permute.xlu0 %1622 }
 0xe02   :  { %v1627_v57 = vmul.f32 %v1623_v53, %v1617_v23 }
 0xe04   :  { %v1631_v59 = vadd.f32 %v1629_v55, %v1627_v57 }
 0xe05   :  { %v1621_v61 = vpop.permute.xlu1 %1620 }
 0xe06   :  { %v1626_v63 = vmul.f32 %v1621_v61, %v1616_v60  ;;  %v1634_v0 = vrot.slane %v1631_v59, 7 }
 0xe08   :  { %v1630_v1 = vadd.f32 %v1628_v62, %v1626_v63 }
 0xe0a   :  { %v1636_v2 = vsel %vm1635_vm10, %v1634_v0, %v1630_v1  ;;  %v1761_v39 = vrot.slane %v1630_v1, 7 }
 0xe0b   :  { %1637 = vrot.lane.b32.xlu0 %v1636_v2, %s3633_s28 }
 0xe7d   :  { %v1638_v3 = vpop.permute.xlu0 %1637 }
 0xe7e   :  { %3180 = vmatmul.mubr.msk.f32.vlgmr.msra.gmra.mrb[22].mxu1 %vm1504_vm11, %v1638_v3 }
 0xe7f   :  { %3356 = vmatpush3.bf16.msra.mxu1 %v3781_v47  ;;  %3193 = vmatprep.mubr.msk.f32.mxu1 %vm3629_vm4, %v3628_v9 }
 0xe80   :  { %3360 = vmatprep.subr.bf16.mxu1 %v3631_v19 }
 0xf51   :  { %v1707_v4 = vpop.f32.mrb[22].mxu1 }
 0xf52   :  { %v1708_v5 = vadd.f32 %v3814_v22, %v1707_v4  ;;  %v3181_v6 = vpop.f32.mrb[23].mxu1 }
 0xf54   :  { %1731 = vrot.lane.b32.xlu0 %v1708_v5, %s3625_s17  ;;  %v1712_v7 = vrot.slane %v1708_v5, 7  ;;  %v1716_v8 = vadd.f32 %v1708_v5, %v3837_v34 }
 0xf56   :  { %1729 = vrot.lane.b32.xlu1 %v1712_v7, %s3625_s17  ;;  %v1715_v10 = vadd.f32 %v1712_v7, %v3841_v36  ;;  %v2941_v11 = vmul.f32 -1.442695, %v1716_v8 }
 0xf58   :  { %v2940_v13 = vmul.f32 -1.442695, %v1715_v10  ;;  %3430 = vpow2.f32 %v2941_v11 }
 0xf5a   :  { %3432 = vpow2.f32 %v2940_v13 }
 0xf62   :  { %v3431_v14 = vpop.eup %3430 }
 0xf63   :  { %v1724_v17 = vadd.f32 1.0, %v3431_v14 }
 0xf64   :  { %v3433_v15 = vpop.eup %3432 }
 0xf65   :  { %v1723_v18 = vadd.f32 1.0, %v3433_v15  ;;  %3434 = vrcp.f32 %v1724_v17 }
 0xf67   :  { %3436 = vrcp.f32 %v1723_v18 }
 0xf6f   :  { %v3435_v20 = vpop.eup %3434 }
 0xf70   :  { %v1750_v40 = vsub.f32 1.0, %v3435_v20  ;;  %v1765_v44 = vmul.f32 %v3435_v20, %v1634_v0 }
 0xf71   :  { %v3437_v25 = vpop.eup %3436 }
 0xf72   :  { %v1749_v41 = vsub.f32 1.0, %v3437_v25  ;;  %v1764_v56 = vmul.f32 %v3437_v25, %v1761_v39 }
 0xfc6   :  { %v1732_v21 = vpop.permute.xlu0 %1731 }
 0xfc7   :  { %v1736_v24 = vmul.f32 %v3435_v20, %v1732_v21 }
 0xfc8   :  { %v1730_v26 = vpop.permute.xlu1 %1729 }
 0xfc9   :  { %v1735_v27 = vmul.f32 %v3437_v25, %v1730_v26  ;;  %1741 = vrot.lane.b32.xlu0 %v1736_v24, %s3632_s1 }
 0xfcb   :  { %1739 = vrot.lane.b32.xlu1 %v1735_v27, %s3632_s1 }
0x103b   :  { %v1742_v28 = vpop.permute.xlu0 %1741 }
0x103c   :  { %v1746_v29 = vadd.f32 %v1742_v28, %v3837_v34 }
0x103d   :  { %v1740_v30 = vpop.permute.xlu1 %1739 }
0x103e   :  { %3438 = vtanh.f32 %v1746_v29  ;;  %v1745_v33 = vadd.f32 %v1740_v30, %v3841_v36 }
0x1040   :  { %3440 = vtanh.f32 %v1745_v33 }
0x1048   :  { %v3439_v35 = vpop.eup %3438 }
0x1049   :  { %1755 = vrot.lane.b32.xlu0 %v3439_v35, %s3633_s28 }
0x104a   :  { %v3441_v37 = vpop.eup %3440 }
0x104b   :  { %1753 = vrot.lane.b32.xlu1 %v3441_v37, %s3633_s28 }
0x10bb   :  { %v1756_v38 = vpop.permute.xlu0 %1755 }
0x10bc   :  { %v1760_v42 = vmul.f32 %v1756_v38, %v1750_v40 }
0x10bd   :  { %v1754_v12 = vpop.permute.xlu1 %1753 }
0x10be   :  { %v1759_v43 = vmul.f32 %v1754_v12, %v1749_v41  ;;  %v1767_v52 = vadd.f32 %v1765_v44, %v1760_v42 }
0x10c0   :  { %v1766_v16 = vadd.f32 %v1764_v56, %v1759_v43  ;;  %v1898_v14 = vrot.slane %v1767_v52, 7 }
0x10c2   :  { %v1770_v45 = vrot.slane %v1766_v16, 1  ;;  %v1897_v17 = vrot.slane %v1766_v16, 7 }
0x10c4   :  { %v1771_v32 = vsel %vm1635_vm10, %v1767_v52, %v1770_v45 }
0x10c5   :  { %1772 = vrot.lane.b32.xlu1 %v1771_v32, %s3633_s28 }
0x1137   :  { %v1773_v46 = vpop.permute.xlu1 %1772 }
0x1138   :  { %3187 = vmatmul.mubr.msk.f32.vlgmr.msra.gmra.mrb[16].mxu0 %vm1504_vm11, %v1773_v46 }
0x1139   :  { %3359 = vmatpush3.bf16.msra.mxu0 %v3781_v47  ;;  %3200 = vmatprep.mubr.msk.f32.mxu0 %vm3629_vm4, %v3628_v9 }
0x113a   :  { %3363 = vmatprep.subr.bf16.mxu0 %v3631_v19 }
0x120b   :  { %v1842_v48 = vpop.f32.mrb[16].mxu0 }
0x120c   :  { %v1843_v49 = vadd.f32 %v3814_v22, %v1842_v48  ;;  %v3188_v50 = vpop.f32.mrb[17].mxu0 }
0x120e   :  { %v1848_v51 = vrot.slane %v1843_v49, 7  ;;  %v1847_v23 = vrot.slane %v1843_v49, 6 }
0x1210   :  { %1867 = vrot.lane.b32.xlu1 %v1848_v51, %s3625_s17  ;;  %1865 = vrot.lane.b32.xlu0 %v1847_v23, %s3625_s17  ;;  %v1852_v53 = vadd.f32 %v1848_v51, %v3837_v34  ;;  %v1851_v55 = vadd.f32 %v1847_v23, %v3841_v36 }
0x1212   :  { %v2944_v57 = vmul.f32 -1.442695, %v1852_v53  ;;  %v2943_v59 = vmul.f32 -1.442695, %v1851_v55 }
0x1214   :  { %3442 = vpow2.f32 %v2944_v57 }
0x1215   :  { %3444 = vpow2.f32 %v2943_v59 }
0x121e   :  { %v3443_v60 = vpop.eup %3442 }
0x121f   :  { %v3445_v61 = vpop.eup %3444  ;;  %v1860_v62 = vadd.f32 1.0, %v3443_v60 }
0x1220   :  { %v1859_v63 = vadd.f32 1.0, %v3445_v61 }
0x1221   :  { %3446 = vrcp.f32 %v1860_v62 }
0x1222   :  { %3448 = vrcp.f32 %v1859_v63 }
0x122b   :  { %v3447_v0 = vpop.eup %3446 }
0x122c   :  { %v3449_v1 = vpop.eup %3448  ;;  %v1886_v15 = vsub.f32 1.0, %v3447_v0  ;;  %v1902_v21 = vmul.f32 %v3447_v0, %v1898_v14 }
0x122d   :  { %v1885_v20 = vsub.f32 1.0, %v3449_v1  ;;  %v1901_v26 = vmul.f32 %v3449_v1, %v1897_v17 }
0x1282   :  { %v1868_v2 = vpop.permute.xlu1 %1867  ;;  %v1866_v3 = vpop.permute.xlu0 %1865 }
0x1283   :  { %v1872_v4 = vmul.f32 %v3447_v0, %v1868_v2  ;;  %v1871_v5 = vmul.f32 %v3449_v1, %v1866_v3 }
0x1285   :  { %1877 = vrot.lane.b32.xlu1 %v1872_v4, %s3632_s1  ;;  %1875 = vrot.lane.b32.xlu0 %v1871_v5, %s3632_s1 }
0x12f7   :  { %v1878_v6 = vpop.permute.xlu1 %1877  ;;  %v1876_v7 = vpop.permute.xlu0 %1875 }
0x12f8   :  { %v1882_v8 = vadd.f32 %v1878_v6, %v3837_v34  ;;  %v1881_v10 = vadd.f32 %v1876_v7, %v3841_v36 }
0x12fa   :  { %3450 = vtanh.f32 %v1882_v8 }
0x12fb   :  { %3452 = vtanh.f32 %v1881_v10 }
0x1304   :  { %v3451_v11 = vpop.eup %3450 }
0x1305   :  { %v3453_v13 = vpop.eup %3452  ;;  %1891 = vrot.lane.b32.xlu1 %v3451_v11, %s3633_s28 }
0x1306   :  { %1889 = vrot.lane.b32.xlu0 %v3453_v13, %s3633_s28 }
0x1377   :  { %v1892_v18 = vpop.permute.xlu1 %1891 }
0x1378   :  { %v1896_v24 = vmul.f32 %v1892_v18, %v1886_v15  ;;  %v1890_v25 = vpop.permute.xlu0 %1889 }
0x1379   :  { %v1895_v27 = vmul.f32 %v1890_v25, %v1885_v20 }
0x137a   :  { %v1904_v28 = vadd.f32 %v1902_v21, %v1896_v24 }
0x137b   :  { %v1903_v29 = vadd.f32 %v1901_v26, %v1895_v27 }
0x137c   :  { %v1908_v30 = vrot.slane %v1904_v28, 1  ;;  %v2036_v62 = vrot.slane %v1904_v28, 7 }
0x137d   :  { %v1907_v33 = vrot.slane %v1903_v29, 2  ;;  %v2035_v0 = vrot.slane %v1903_v29, 7 }
0x137f   :  { %v1909_v35 = vsel %vm1635_vm10, %v1908_v30, %v1907_v33 }
0x1380   :  { %1910 = vrot.lane.b32.xlu0 %v1909_v35, %s3633_s28 }
0x13f2   :  { %v1911_v37 = vpop.permute.xlu0 %1910 }
0x13f3   :  { %3194 = vmatmul.mubr.msk.f32.vlgmr.msra.gmra.mrb[24].mxu1 %vm1504_vm11, %v1911_v37 }
0x13f4   :  { %3362 = vmatpush3.bf16.msra.mxu1 %v3781_v47  ;;  %3207 = vmatprep.mubr.msk.f32.mxu1 %vm3629_vm4, %v3628_v9 }
0x13f5   :  { %3366 = vmatprep.subr.bf16.mxu1 %v3631_v19 }
0x14c6   :  { %v1980_v38 = vpop.f32.mrb[24].mxu1 }
0x14c7   :  { %v1981_v39 = vadd.f32 %v3814_v22, %v1980_v38  ;;  %v3195_v40 = vpop.f32.mrb[25].mxu1 }
0x14c9   :  { %v1986_v41 = vrot.slane %v1981_v39, 6  ;;  %v1985_v12 = vrot.slane %v1981_v39, 5 }
0x14cb   :  { %2005 = vrot.lane.b32.xlu0 %v1986_v41, %s3625_s17  ;;  %2003 = vrot.lane.b32.xlu1 %v1985_v12, %s3625_s17  ;;  %v1990_v42 = vadd.f32 %v1986_v41, %v3837_v34  ;;  %v1989_v56 = vadd.f32 %v1985_v12, %v3841_v36 }
0x14cd   :  { %v2947_v43 = vmul.f32 -1.442695, %v1990_v42  ;;  %v2946_v44 = vmul.f32 -1.442695, %v1989_v56 }
0x14cf   :  { %3454 = vpow2.f32 %v2947_v43 }
0x14d0   :  { %3456 = vpow2.f32 %v2946_v44 }
0x14d9   :  { %v3455_v16 = vpop.eup %3454 }
0x14da   :  { %v3457_v52 = vpop.eup %3456  ;;  %v1998_v45 = vadd.f32 1.0, %v3455_v16 }
0x14db   :  { %v1997_v32 = vadd.f32 1.0, %v3457_v52 }
0x14dc   :  { %3458 = vrcp.f32 %v1998_v45 }
0x14dd   :  { %3460 = vrcp.f32 %v1997_v32 }
0x14e6   :  { %v3459_v46 = vpop.eup %3458 }
0x14e7   :  { %v3461_v48 = vpop.eup %3460  ;;  %v2024_v63 = vsub.f32 1.0, %v3459_v46  ;;  %v2040_v3 = vmul.f32 %v3459_v46, %v2036_v62 }
0x14e8   :  { %v2023_v2 = vsub.f32 1.0, %v3461_v48  ;;  %v2039_v6 = vmul.f32 %v3461_v48, %v2035_v0 }
0x153d   :  { %v2006_v49 = vpop.permute.xlu0 %2005  ;;  %v2004_v50 = vpop.permute.xlu1 %2003 }
0x153e   :  { %v2010_v51 = vmul.f32 %v3459_v46, %v2006_v49  ;;  %v2009_v23 = vmul.f32 %v3461_v48, %v2004_v50 }
0x1540   :  { %2015 = vrot.lane.b32.xlu0 %v2010_v51, %s3632_s1  ;;  %2013 = vrot.lane.b32.xlu1 %v2009_v23, %s3632_s1 }
0x15b2   :  { %v2016_v53 = vpop.permute.xlu0 %2015  ;;  %v2014_v55 = vpop.permute.xlu1 %2013 }
0x15b3   :  { %v2020_v57 = vadd.f32 %v2016_v53, %v3837_v34  ;;  %v2019_v59 = vadd.f32 %v2014_v55, %v3841_v36 }
0x15b5   :  { %3462 = vtanh.f32 %v2020_v57 }
0x15b6   :  { %3464 = vtanh.f32 %v2019_v59 }
0x15bf   :  { %v3463_v60 = vpop.eup %3462 }
0x15c0   :  { %v3465_v61 = vpop.eup %3464  ;;  %2029 = vrot.lane.b32.xlu0 %v3463_v60, %s3633_s28 }
0x15c1   :  { %2027 = vrot.lane.b32.xlu1 %v3465_v61, %s3633_s28 }
0x1632   :  { %v2030_v1 = vpop.permute.xlu0 %2029 }
0x1633   :  { %v2034_v4 = vmul.f32 %v2030_v1, %v2024_v63  ;;  %v2028_v5 = vpop.permute.xlu1 %2027 }
0x1634   :  { %v2033_v7 = vmul.f32 %v2028_v5, %v2023_v2 }
0x1635   :  { %v2042_v8 = vadd.f32 %v2040_v3, %v2034_v4 }
0x1636   :  { %v2041_v10 = vadd.f32 %v2039_v6, %v2033_v7 }
0x1637   :  { %v2046_v11 = vrot.slane %v2042_v8, 2  ;;  %v2174_v45 = vrot.slane %v2042_v8, 7 }
0x1638   :  { %v2045_v13 = vrot.slane %v2041_v10, 3  ;;  %v2173_v46 = vrot.slane %v2041_v10, 7 }
0x163a   :  { %v2047_v14 = vsel %vm1635_vm10, %v2046_v11, %v2045_v13 }
0x163b   :  { %2048 = vrot.lane.b32.xlu1 %v2047_v14, %s3633_s28 }
0x16ad   :  { %v2049_v15 = vpop.permute.xlu1 %2048 }
0x16ae   :  { %3201 = vmatmul.mubr.msk.f32.vlgmr.msra.gmra.mrb[18].mxu0 %vm1504_vm11, %v2049_v15 }
0x16af   :  { %3365 = vmatpush3.bf16.msra.mxu0 %v3781_v47  ;;  %3214 = vmatprep.mubr.msk.f32.mxu0 %vm3629_vm4, %v3628_v9 }
0x16b0   :  { %3369 = vmatprep.subr.bf16.mxu0 %v3631_v19 }
0x1781   :  { %v2118_v17 = vpop.f32.mrb[18].mxu0 }
0x1782   :  { %v2119_v18 = vadd.f32 %v3814_v22, %v2118_v17  ;;  %v3202_v20 = vpop.f32.mrb[19].mxu0 }
0x1784   :  { %v2124_v21 = vrot.slane %v2119_v18, 5  ;;  %v2123_v24 = vrot.slane %v2119_v18, 4 }
0x1786   :  { %2143 = vrot.lane.b32.xlu1 %v2124_v21, %s3625_s17  ;;  %2141 = vrot.lane.b32.xlu0 %v2123_v24, %s3625_s17  ;;  %v2128_v25 = vadd.f32 %v2124_v21, %v3837_v34  ;;  %v2127_v26 = vadd.f32 %v2123_v24, %v3841_v36 }
0x1788   :  { %v2950_v27 = vmul.f32 -1.442695, %v2128_v25  ;;  %v2949_v28 = vmul.f32 -1.442695, %v2127_v26 }
0x178a   :  { %3466 = vpow2.f32 %v2950_v27 }
0x178b   :  { %3468 = vpow2.f32 %v2949_v28 }
0x1794   :  { %v3467_v29 = vpop.eup %3466 }
0x1795   :  { %v3469_v30 = vpop.eup %3468  ;;  %v2136_v33 = vadd.f32 1.0, %v3467_v29 }
0x1796   :  { %v2135_v35 = vadd.f32 1.0, %v3469_v30 }
0x1797   :  { %3470 = vrcp.f32 %v2136_v33 }
0x1798   :  { %3472 = vrcp.f32 %v2135_v35 }
0x17a1   :  { %v3471_v37 = vpop.eup %3470 }
0x17a2   :  { %v3473_v38 = vpop.eup %3472  ;;  %v2162_v32 = vsub.f32 1.0, %v3471_v37  ;;  %v2178_v50 = vmul.f32 %v3471_v37, %v2174_v45 }
0x17a3   :  { %v2161_v49 = vsub.f32 1.0, %v3473_v38  ;;  %v2177_v53 = vmul.f32 %v3473_v38, %v2173_v46 }
0x17f8   :  { %v2144_v39 = vpop.permute.xlu1 %2143  ;;  %v2142_v40 = vpop.permute.xlu0 %2141 }
0x17f9   :  { %v2148_v41 = vmul.f32 %v3471_v37, %v2144_v39  ;;  %v2147_v12 = vmul.f32 %v3473_v38, %v2142_v40 }
0x17fb   :  { %2153 = vrot.lane.b32.xlu1 %v2148_v41, %s3632_s1  ;;  %2151 = vrot.lane.b32.xlu0 %v2147_v12, %s3632_s1 }
0x186d   :  { %v2154_v42 = vpop.permute.xlu1 %2153  ;;  %v2152_v56 = vpop.permute.xlu0 %2151 }
0x186e   :  { %v2158_v43 = vadd.f32 %v2154_v42, %v3837_v34  ;;  %v2157_v44 = vadd.f32 %v2152_v56, %v3841_v36 }
0x1870   :  { %3474 = vtanh.f32 %v2158_v43 }
0x1871   :  { %3476 = vtanh.f32 %v2157_v44 }
0x187a   :  { %v3475_v16 = vpop.eup %3474 }
0x187b   :  { %v3477_v52 = vpop.eup %3476  ;;  %2167 = vrot.lane.b32.xlu1 %v3475_v16, %s3633_s28 }
0x187c   :  { %2165 = vrot.lane.b32.xlu0 %v3477_v52, %s3633_s28 }
0x18ed   :  { %v2168_v48 = vpop.permute.xlu1 %2167 }
0x18ee   :  { %v2172_v51 = vmul.f32 %v2168_v48, %v2162_v32  ;;  %v2166_v23 = vpop.permute.xlu0 %2165 }
0x18ef   :  { %v2171_v55 = vmul.f32 %v2166_v23, %v2161_v49 }
0x18f0   :  { %v2180_v57 = vadd.f32 %v2178_v50, %v2172_v51 }
0x18f1   :  { %v2179_v59 = vadd.f32 %v2177_v53, %v2171_v55 }
0x18f2   :  { %v2184_v60 = vrot.slane %v2180_v57, 3  ;;  %v2312_v30 = vrot.slane %v2180_v57, 7 }
0x18f3   :  { %v2183_v61 = vrot.slane %v2179_v59, 4  ;;  %v2311_v35 = vrot.slane %v2179_v59, 7 }
0x18f5   :  { %v2185_v62 = vsel %vm1635_vm10, %v2184_v60, %v2183_v61 }
0x18f6   :  { %2186 = vrot.lane.b32.xlu0 %v2185_v62, %s3633_s28 }
0x1968   :  { %v2187_v63 = vpop.permute.xlu0 %2186 }
0x1969   :  { %3208 = vmatmul.mubr.msk.f32.vlgmr.msra.gmra.mrb[26].mxu1 %vm1504_vm11, %v2187_v63 }
0x196a   :  { %3368 = vmatpush3.bf16.msra.mxu1 %v3781_v47  ;;  %3221 = vmatprep.mubr.msk.f32.mxu1 %vm3629_vm4, %v3628_v9 }
0x1a3c   :  { %v2256_v0 = vpop.f32.mrb[26].mxu1 }
0x1a3d   :  { %v2257_v1 = vadd.f32 %v3814_v22, %v2256_v0  ;;  %v3209_v2 = vpop.f32.mrb[27].mxu1 }
0x1a3f   :  { %v2262_v3 = vrot.slane %v2257_v1, 4  ;;  %v2261_v4 = vrot.slane %v2257_v1, 3 }
0x1a41   :  { %2281 = vrot.lane.b32.xlu0 %v2262_v3, %s3625_s17  ;;  %2279 = vrot.lane.b32.xlu1 %v2261_v4, %s3625_s17  ;;  %v2266_v5 = vadd.f32 %v2262_v3, %v3837_v34  ;;  %v2265_v6 = vadd.f32 %v2261_v4, %v3841_v36 }
0x1a43   :  { %v2953_v7 = vmul.f32 -1.442695, %v2266_v5  ;;  %v2952_v8 = vmul.f32 -1.442695, %v2265_v6 }
0x1a45   :  { %3478 = vpow2.f32 %v2953_v7 }
0x1a46   :  { %3480 = vpow2.f32 %v2952_v8 }
0x1a4f   :  { %v3479_v47 = vpop.eup %3478 }
0x1a50   :  { %v3481_v10 = vpop.eup %3480  ;;  %v2274_v11 = vadd.f32 1.0, %v3479_v47 }
0x1a51   :  { %v2273_v13 = vadd.f32 1.0, %v3481_v10 }
0x1a52   :  { %3482 = vrcp.f32 %v2274_v11 }
0x1a53   :  { %3484 = vrcp.f32 %v2273_v13 }
0x1a5c   :  { %v3483_v14 = vpop.eup %3482 }
0x1a5d   :  { %v3485_v15 = vpop.eup %3484  ;;  %v2300_v33 = vsub.f32 1.0, %v3483_v14  ;;  %v2316_v39 = vmul.f32 %v3483_v14, %v2312_v30 }
0x1a5e   :  { %v2299_v38 = vsub.f32 1.0, %v3485_v15  ;;  %v2315_v12 = vmul.f32 %v3485_v15, %v2311_v35 }
0x1ab3   :  { %v2282_v17 = vpop.permute.xlu0 %2281  ;;  %v2280_v18 = vpop.permute.xlu1 %2279 }
0x1ab4   :  { %v2286_v20 = vmul.f32 %v3483_v14, %v2282_v17  ;;  %v2285_v21 = vmul.f32 %v3485_v15, %v2280_v18 }
0x1ab6   :  { %2291 = vrot.lane.b32.xlu0 %v2286_v20, %s3632_s1  ;;  %2289 = vrot.lane.b32.xlu1 %v2285_v21, %s3632_s1 }
0x1b28   :  { %v2292_v24 = vpop.permute.xlu0 %2291  ;;  %v2290_v25 = vpop.permute.xlu1 %2289 }
0x1b29   :  { %v2296_v26 = vadd.f32 %v2292_v24, %v3837_v34  ;;  %v2295_v27 = vadd.f32 %v2290_v25, %v3841_v36 }
0x1b2b   :  { %3486 = vtanh.f32 %v2296_v26 }
0x1b2c   :  { %3488 = vtanh.f32 %v2295_v27 }
0x1b35   :  { %v3487_v28 = vpop.eup %3486 }
0x1b36   :  { %v3489_v29 = vpop.eup %3488  ;;  %2305 = vrot.lane.b32.xlu0 %v3487_v28, %s3633_s28 }
0x1b37   :  { %2303 = vrot.lane.b32.xlu1 %v3489_v29, %s3633_s28 }
0x1ba8   :  { %v2306_v37 = vpop.permute.xlu0 %2305 }
0x1ba9   :  { %v2310_v40 = vmul.f32 %v2306_v37, %v2300_v33  ;;  %v2304_v41 = vpop.permute.xlu1 %2303 }
0x1baa   :  { %v2309_v42 = vmul.f32 %v2304_v41, %v2299_v38  ;;  %v2960_v41 = vld [vmem:[#allocation7 + $0xe] ss:$0 sm:$0xff] }
0x1bab   :  { %v2318_v56 = vadd.f32 %v2316_v39, %v2310_v40  ;;  %v2961_v40 = vld [vmem:[#allocation7 + $0xf] ss:$0 sm:$0xff] }
0x1bac   :  { %v2317_v43 = vadd.f32 %v2315_v12, %v2309_v42  ;;  %v2600_v12 = vadd.f32 %v2960_v41, %v3808_v54 }
0x1bad   :  { %v2322_v44 = vrot.slane %v2318_v56, 4  ;;  %v2450_v10 = vrot.slane %v2318_v56, 7  ;;  %v2601_v56 = vadd.f32 %v2960_v41, %v3812_v58 }
0x1bae   :  { %v2321_v16 = vrot.slane %v2317_v43, 5  ;;  %v2449_v13 = vrot.slane %v2317_v43, 7 }
0x1bb0   :  { %v2323_v52 = vsel %vm1635_vm10, %v2322_v44, %v2321_v16  ;;  %v2607_v44 = vadd.f32 %v2961_v40, %v2600_v12 }
0x1bb1   :  { %2324 = vrot.lane.b32.xlu1 %v2323_v52, %s3633_s28  ;;  %v2608_v52 = vadd.f32 %v2961_v40, %v2601_v56 }
0x1c23   :  { %v2325_v45 = vpop.permute.xlu1 %2324 }
0x1c24   :  { %3215 = vmatmul.mubr.msk.f32.vlgmr.msra.gmra.mrb[20].mxu0 %vm1504_vm11, %v2325_v45  ;;  %v2962_v45 = vmul.f32 -1.442695, %v2607_v44 }
0x1c25   :  { %3238 = vmatprep.mubr.msk.f32.mxu0 %vm3629_vm4, %v3628_v9 }
0x1cf7   :  { %v2394_v32 = vpop.f32.mrb[20].mxu0 }
0x1cf8   :  { %v2395_v46 = vadd.f32 %v3814_v22, %v2394_v32  ;;  %v3216_v48 = vpop.f32.mrb[21].mxu0  ;;  %v2963_v32 = vmul.f32 -1.442695, %v2608_v52 }
0x1cfa   :  { %v2400_v49 = vrot.slane %v2395_v46, 3  ;;  %v2399_v50 = vrot.slane %v2395_v46, 2 }
0x1cfc   :  { %2419 = vrot.lane.b32.xlu1 %v2400_v49, %s3625_s17  ;;  %2417 = vrot.lane.b32.xlu0 %v2399_v50, %s3625_s17  ;;  %v2404_v51 = vadd.f32 %v2400_v49, %v3837_v34  ;;  %v2403_v23 = vadd.f32 %v2399_v50, %v3841_v36 }
0x1cfe   :  { %v2956_v53 = vmul.f32 -1.442695, %v2404_v51  ;;  %v2955_v55 = vmul.f32 -1.442695, %v2403_v23 }
0x1d00   :  { %3490 = vpow2.f32 %v2956_v53 }
0x1d01   :  { %3492 = vpow2.f32 %v2955_v55 }
0x1d0a   :  { %v3491_v57 = vpop.eup %3490 }
0x1d0b   :  { %v3493_v59 = vpop.eup %3492  ;;  %v2412_v60 = vadd.f32 1.0, %v3491_v57 }
0x1d0c   :  { %v2411_v61 = vadd.f32 1.0, %v3493_v59 }
0x1d0d   :  { %3494 = vrcp.f32 %v2412_v60 }
0x1d0e   :  { %3496 = vrcp.f32 %v2411_v61 }
0x1d17   :  { %v3495_v62 = vpop.eup %3494 }
0x1d18   :  { %v3497_v63 = vpop.eup %3496  ;;  %v2438_v11 = vsub.f32 1.0, %v3495_v62  ;;  %v2454_v17 = vmul.f32 %v3495_v62, %v2450_v10 }
0x1d19   :  { %v2437_v15 = vsub.f32 1.0, %v3497_v63  ;;  %v2453_v21 = vmul.f32 %v3497_v63, %v2449_v13  ;;  %v2787_v13 = vld [vmem:[#allocation5 + $0x58] sm:$0xff] }
0x1d6e   :  { %v2420_v0 = vpop.permute.xlu1 %2419  ;;  %v2418_v1 = vpop.permute.xlu0 %2417 }
0x1d6f   :  { %v2424_v2 = vmul.f32 %v3495_v62, %v2420_v0  ;;  %v2423_v3 = vmul.f32 %v3497_v63, %v2418_v1 }
0x1d71   :  { %2429 = vrot.lane.b32.xlu1 %v2424_v2, %s3632_s1  ;;  %2427 = vrot.lane.b32.xlu0 %v2423_v3, %s3632_s1 }
0x1de3   :  { %v2430_v4 = vpop.permute.xlu1 %2429  ;;  %v2428_v5 = vpop.permute.xlu0 %2427 }
0x1de4   :  { %v2434_v6 = vadd.f32 %v2430_v4, %v3837_v34  ;;  %v2433_v7 = vadd.f32 %v2428_v5, %v3841_v36 }
0x1de6   :  { %3498 = vtanh.f32 %v2434_v6 }
0x1de7   :  { %3500 = vtanh.f32 %v2433_v7 }
0x1df0   :  { %v3499_v8 = vpop.eup %3498 }
0x1df1   :  { %v3501_v47 = vpop.eup %3500  ;;  %2443 = vrot.lane.b32.xlu1 %v3499_v8, %s3633_s28 }
0x1df2   :  { %2441 = vrot.lane.b32.xlu0 %v3501_v47, %s3633_s28 }
0x1e63   :  { %v2444_v14 = vpop.permute.xlu1 %2443 }
0x1e64   :  { %v2448_v18 = vmul.f32 %v2444_v14, %v2438_v11  ;;  %v2442_v20 = vpop.permute.xlu0 %2441  ;;  %v2786_v11 = vld [vmem:[#allocation5 + $0x50] sm:$0xff]  ;;  %v2788_v14 = vld [vmem:[#allocation5 + $0x60] sm:$0xff] }
0x1e65   :  { %v2447_v24 = vmul.f32 %v2442_v20, %v2437_v15  ;;  %v3370_v15 = vpack.c.bf16 %v2787_v13, %v2786_v11 }
0x1e66   :  { %v3956_v25 = vadd.f32 %v2454_v17, %v2448_v18  ;;  %v2789_v17 = vld [vmem:[#allocation5 + $0x68] sm:$0xff] }
0x1e67   :  { %v3958_v26 = vadd.f32 %v2453_v21, %v2447_v24  ;;  %3371 = vmatpush3.bf16.msra.mxu0 %v3370_v15  ;;  %v3373_v20 = vpack.c.bf16 %v2789_v17, %v2788_v14  ;;  %v2790_v24 = vld [vmem:[#allocation5 + $0x70] sm:$0xff] }
0x1e68   :  { %v2460_v27 = vrot.slane %v3956_v25, 5  ;;  %3372 = vmatprep.subr.bf16.mxu0 %v3631_v19 }
0x1e69   :  { %v2459_v28 = vrot.slane %v3958_v26, 6 }
0x1e6b   :  { %v2461_v29 = vsel %vm1635_vm10, %v2460_v27, %v2459_v28  ;;  %3374 = vmatpush3.bf16.msra.mxu0 %v3373_v20  ;;  %v2791_v27 = vld [vmem:[#allocation5 + $0x78] sm:$0xff] }
0x1e6c   :  { %2462 = vrot.lane.b32.xlu0 %v2461_v29, %s3633_s28  ;;  %3375 = vmatprep.subr.bf16.mxu0 %v3631_v19  ;;  %v3376_v28 = vpack.c.bf16 %v2791_v27, %v2790_v24  ;;  %v2792_v29 = vld [vmem:[#allocation5 + $0x80] sm:$0xff] }
0x1e6f   :  { %3377 = vmatpush3.bf16.msra.mxu0 %v3376_v28 }
0x1e70   :  { %3236 = vmatprep.subr.mxu0 %v3628_v9  ;;  %v2778_v9 = vrot.slane %v3834_v31, 1 }
0x1e73   :  { %3237 = vmatpush3.msra.mxu0 %v2792_v29 }
0x1ede   :  { %v2463_v30 = vpop.permute.xlu0 %2462 }
0x1edf   :  { %3222 = vmatmul.mubr.msk.f32.vlgmr.msra.gmra.mrb[28].mxu1 %vm1504_vm11, %v2463_v30  ;;  %v2588_v30 = vrot.slane %v3956_v25, 7 }
0x1fb2   :  { %v2532_v33 = vpop.f32.mrb[28].mxu1 }
0x1fb3   :  { %v2533_v35 = vadd.f32 %v3814_v22, %v2532_v33  ;;  %v3223_v37 = vpop.f32.mrb[29].mxu1 }
0x1fb5   :  { %v2538_v38 = vrot.slane %v2533_v35, 2  ;;  %v2537_v39 = vrot.slane %v2533_v35, 1  ;;  %v2587_v35 = vrot.slane %v3958_v26, 7 }
0x1fb7   :  { %2557 = vrot.lane.b32.xlu1 %v2538_v38, %s3625_s17  ;;  %2555 = vrot.lane.b32.xlu0 %v2537_v39, %s3625_s17  ;;  %v2542_v42 = vadd.f32 %v2538_v38, %v3837_v34  ;;  %v2541_v43 = vadd.f32 %v2537_v39, %v3841_v36 }
0x1fb9   :  { %v2959_v22 = vmul.f32 -1.442695, %v2542_v42  ;;  %v2958_v16 = vmul.f32 -1.442695, %v2541_v43 }
0x1fbb   :  { %2622 = vrot.lane.b32.xlu1 %v2961_v40, %s3625_s17  ;;  %3502 = vpow2.f32 %v2959_v22 }
0x1fbc   :  { %3504 = vpow2.f32 %v2958_v16 }
0x1fbd   :  { %3506 = vpow2.f32 %v2962_v45 }
0x1fbe   :  { %3508 = vpow2.f32 %v2963_v32 }
0x1fc5   :  { %v3503_v46 = vpop.eup %3502 }
0x1fc6   :  { %v3505_v48 = vpop.eup %3504  ;;  %v2550_v49 = vadd.f32 1.0, %v3503_v46 }
0x1fc7   :  { %v3507_v54 = vpop.eup %3506  ;;  %v2549_v50 = vadd.f32 1.0, %v3505_v48 }
0x1fc8   :  { %v3509_v51 = vpop.eup %3508  ;;  %3510 = vrcp.f32 %v2550_v49  ;;  %v2615_v58 = vadd.f32 1.0, %v3507_v54 }
0x1fc9   :  { %3512 = vrcp.f32 %v2549_v50  ;;  %v2616_v23 = vadd.f32 1.0, %v3509_v51 }
0x1fca   :  { %3514 = vrcp.f32 %v2615_v58 }
0x1fcb   :  { %3516 = vrcp.f32 %v2616_v23 }
0x1fd2   :  { %v3511_v53 = vpop.eup %3510 }
0x1fd3   :  { %v3513_v55 = vpop.eup %3512  ;;  %v2576_v33 = vsub.f32 1.0, %v3511_v53  ;;  %v2592_v39 = vmul.f32 %v3511_v53, %v2588_v30 }
0x1fd4   :  { %v3973_v62 = vpop.eup %3514  ;;  %v2575_v38 = vsub.f32 1.0, %v3513_v55  ;;  %v2591_v41 = vmul.f32 %v3513_v55, %v2587_v35 }
0x1fd5   :  { %v3977_v63 = vpop.eup %3516  ;;  %v2639_v45 = vsub.f32 1.0, %v3973_v62  ;;  %v2651_v48 = vmul.f32 0.0, %v3973_v62 }
0x1fd6   :  { %v2640_v26 = vsub.f32 1.0, %v3977_v63  ;;  %v2652_v44 = vmul.f32 0.0, %v3977_v63 }
0x2029   :  { %v2558_v57 = vpop.permute.xlu1 %2557  ;;  %v2556_v59 = vpop.permute.xlu0 %2555 }
0x202a   :  { %v2562_v60 = vmul.f32 %v3511_v53, %v2558_v57  ;;  %v2561_v61 = vmul.f32 %v3513_v55, %v2556_v59 }
0x202c   :  { %2567 = vrot.lane.b32.xlu0 %v2562_v60, %s3632_s1  ;;  %2565 = vrot.lane.b32.xlu1 %v2561_v61, %s3632_s1  ;;  %v2965_v60 = vld [vmem:[#allocation7 + $0x11] ss:$0 sm:$0xff] }
0x202d   :  { %v2623_v0 = vpop.permute.xlu1 %2622 }
0x202e   :  { %v2625_v1 = vmul.f32 %v3973_v62, %v2623_v0  ;;  %v2626_v2 = vmul.f32 %v3977_v63, %v2623_v0 }
0x2030   :  { %2631 = vrot.lane.b32.xlu0 %v2626_v2, %s3632_s1  ;;  %2629 = vrot.lane.b32.xlu1 %v2625_v1, %s3632_s1 }
0x209e   :  { %v2568_v3 = vpop.permute.xlu0 %2567  ;;  %v2566_v4 = vpop.permute.xlu1 %2565 }
0x209f   :  { %v2572_v5 = vadd.f32 %v2568_v3, %v3837_v34  ;;  %v2571_v6 = vadd.f32 %v2566_v4, %v3841_v36 }
0x20a1   :  { %3518 = vtanh.f32 %v2572_v5 }
0x20a2   :  { %3520 = vtanh.f32 %v2571_v6  ;;  %v2632_v7 = vpop.permute.xlu0 %2631  ;;  %v2630_v8 = vpop.permute.xlu1 %2629 }
0x20a3   :  { %v2636_v47 = vadd.f32 %v2632_v7, %v2601_v56  ;;  %v2635_v10 = vadd.f32 %v2630_v8, %v2600_v12 }
0x20a5   :  { %3522 = vtanh.f32 %v2636_v47 }
0x20a6   :  { %3524 = vtanh.f32 %v2635_v10 }
0x20ab   :  { %v3519_v18 = vpop.eup %3518 }
0x20ac   :  { %v3521_v21 = vpop.eup %3520  ;;  %2581 = vrot.lane.b32.xlu0 %v3519_v18, %s3633_s28 }
0x20ad   :  { %2579 = vrot.lane.b32.xlu1 %v3521_v21, %s3633_s28 }
0x20af   :  { %v3523_v34 = vpop.eup %3522 }
0x20b0   :  { %v3525_v36 = vpop.eup %3524  ;;  %2645 = vrot.lane.b32.xlu0 %v3523_v34, %s3633_s28 }
0x20b1   :  { %2643 = vrot.lane.b32.xlu1 %v3525_v36, %s3633_s28 }
0x211e   :  { %v2582_v37 = vpop.permute.xlu0 %2581 }
0x211f   :  { %v2586_v40 = vmul.f32 %v2582_v37, %v2576_v33  ;;  %v2580_v19 = vpop.permute.xlu1 %2579 }
0x2120   :  { %v2585_v12 = vmul.f32 %v2580_v19, %v2575_v38 }
0x2121   :  { %v2594_v42 = vadd.f32 %v2592_v39, %v2586_v40 }
0x2122   :  { %v2593_v56 = vadd.f32 %v2591_v41, %v2585_v12  ;;  %v2646_v25 = vpop.permute.xlu0 %2645 }
0x2123   :  { %v2765_v43 = vrot.slane %v2594_v42, 7  ;;  %v2650_v22 = vmul.f32 %v2646_v25, %v2640_v26  ;;  %v2644_v16 = vpop.permute.xlu1 %2643 }
0x2124   :  { %2766 = vrot.lane.b32.xlu0 %v2593_v56, %s3633_s28  ;;  %v2649_v32 = vmul.f32 %v2644_v16, %v2639_v45 }
0x2125   :  { %2768 = vrot.lane.b32.xlu1 %v2765_v43, %s3633_s28  ;;  %v2654_v52 = vadd.f32 %v2652_v44, %v2650_v22 }
0x2126   :  { %v2653_v50 = vadd.f32 %v2651_v48, %v2649_v32 }
0x2127   :  { %v2774_v46 = vrot.slane %v2654_v52, 7 }
0x2128   :  { %2779 = vrot.lane.b32.xlu0 %v2778_v9, %s3632_s1 }
0x2196   :  { %v2767_v49 = vpop.permute.xlu0 %2766 }
0x2197   :  { %v2769_v54 = vpop.permute.xlu1 %2768  ;;  %v2782_v51 = vsel %vm1504_vm11, %v2767_v49, %v2653_v50 }
0x2198   :  { %v2783_v31 = vsel %vm1504_vm11, %v2769_v54, %v2774_v46 }
0x219a   :  { %v2780_v58 = vpop.permute.xlu0 %2779 }
0x219b   :  { %v2784_v23 = vsel %vm176_vm3, %v2782_v51, %v2780_v58  ;;  %v2785_v53 = vsel %vm176_vm3, %v2783_v31, %v2780_v58 }
0x219c   :  { %v2801_v55 = vrot.slane %v2784_v23, 7  ;;  %v2802_v57 = vrot.slane %v2785_v53, 7 }
0x219e   :  { %v2803_v59 = vsel %vm2800_vm12, %v2801_v55, %v2802_v57 }
0x219f   :  { %3239 = vmatmul.mubr.msk.f32.vlgmr.msra.gmra.mrb[22].mxu0 %vm2804_vm13, %v2803_v59 }
0x2272   :  { %v2873_v61 = vpop.f32.mrb[22].mxu0 }
0x2273   :  { %v2874_v62 = vadd.f32 %v2965_v60, %v2873_v61  ;;  %v3240_v63 = vpop.f32.mrb[23].mxu0 }
0x2275   :  { %2878 = vst.msk [vmem:[#allocation8] sm:$0x3] %vm2877_vm14, %v2874_v62 }
0x2276   :  { %3603 = shalt.err (!%p3600_p0)
}
0x2277   :  { %s3604_s16 = scalar_lea.hbm %s4023_s5, 32 }
0x2278   :  { %p3605_p1 = scmp.ne.s32.totalorder %s4023_s5, %s3604_s16  ;;  %p3608_p2 = scmp.lt.u32.totalorder %s3604_s16, %s4023_s5 }
0x227a   :  { %p3610_p3 = pnand %p3608_p2, %p3605_p1 }
0x227c   :  { %3613 = shalt.err (!%p3610_p3)
}
0x227d   :  { %2888 = dma.vmem_to_hbm [thread:$0]  %s2886_s12, 32, %s4023_s5, [#allocation4]  }
0x227e   :  { %3618 = dma.done.wait [#allocation4], 32  }
0x227f   :  { %3619 = vsyncadd [#allocation4], 4294967264 }
0x2280   :  { %2892 = vsyncpa [#allocation3], 1 }
0x2281   :  { %2893 = vsyncpa [#allocation6], 1 }
0x2282   :  { %2894 = vsyncpa [#allocation4], 1 }

</bundles_post_ra>
